<compile_context>
chip_gen: v7x
topology: tpu7x:2x2x1
jax: 0.10.0
libtpu: 0.0.40
codegen_flags: <defaults>
</compile_context>

<pallas_src>
from functools import partial

import jax
import jax.numpy as jnp
from jax import lax
from jax.experimental import pallas as pl
from jax.experimental.pallas import tpu as pltpu


def _pdr_kernel(xp_ref, wb_ref, bn_shift_ref, w_ca1_ref, w_ca2_ref, w_head_ref,
                o_ref, y_ref, *, sub_batch, channels, length, pad, dilations):
    """ParallelDilationRes forward for one sub-batch.

    xp_ref      : (Bb, C, L + 2*pad)  zero-padded input
    wb_ref      : (15, C, C)          BN-scale-folded conv taps, [branch*5 + tap]
    bn_shift_ref: (3C, 1)             BatchNorm shift (beta - mean*scale)
    w_ca1_ref   : (3C//2, 3C)         ChannelAttention 1x1 conv #1
    w_ca2_ref   : (3C, 3C//2)         ChannelAttention 1x1 conv #2
    w_head_ref  : (C, 3C)             head 1x1 conv
    o_ref       : (Bb, C, L)          output
    y_ref       : (3C, L) f32 scratch for the concatenated branch features
    """
    C, L = channels, length

    def sigmoid(v):
        # exact form keeps the correctness check tight; pl.reciprocal(.,
        # approx=True) could offload the divide to the EUP if needed.
        return 1.0 / (1.0 + jnp.exp(-v))

    bshift = bn_shift_ref[...]        # (3C, 1)
    w_ca1 = w_ca1_ref[...]            # (3C//2, 3C)
    w_ca2 = w_ca2_ref[...]            # (3C, 3C//2)
    w_head = w_head_ref[...]          # (C, 3C)

    for bi in range(sub_batch):                               # static, small
        xp_b = xp_ref[bi]                                     # (C, L + 2*pad)

        # ---- 3 dilated-conv branches -> BatchNorm(shift) -> Swish,
        #      assembled into the (3C, L) scratch at aligned row offsets.
        for br, d in enumerate(dilations):
            acc = jnp.zeros((C, L), jnp.float32)
            for k in range(5):                                # kernel taps, static
                off = pad - 2 * d + k * d                     # "same" padding offset
                acc += jnp.dot(wb_ref[br * 5 + k], xp_b[:, off:off + L],
                               preferred_element_type=jnp.float32)
            acc = acc + bshift[br * C:(br + 1) * C, :]        # BN (scale pre-folded)
            y_ref[br * C:(br + 1) * C, :] = acc * sigmoid(acc)  # Swish

        y = y_ref[...]                                        # (3C, L)

        # ---- ChannelAttention: global avg pool -> 1x1 -> LeakyReLU -> 1x1 -> Sigmoid
        pooled = jnp.sum(y, axis=1, keepdims=True) * (1.0 / L)             # (3C, 1)
        a = jnp.dot(w_ca1, pooled, preferred_element_type=jnp.float32)     # (3C//2, 1)
        a = jnp.where(a > 0, a, 0.01 * a)                                  # LeakyReLU(0.01)
        a = sigmoid(jnp.dot(w_ca2, a, preferred_element_type=jnp.float32))  # (3C, 1)

        # ---- head 1x1 conv (3C -> C), residual, Swish
        h = jnp.dot(w_head, y * a, preferred_element_type=jnp.float32)     # (C, L)
        z = xp_b[:, pad:pad + L] + h
        o_ref[bi] = (z * sigmoid(z)).astype(o_ref.dtype)


def parallel_dilation_res(x, branch_w, bn_gamma, bn_beta, bn_mean, bn_var,
                          w_ca1, w_ca2, w_head, *, eps=1e-5, batch_blocks=1):
    """x: (B, C, L) -> (B, C, L). Eval-mode forward of ParallelDilationRes.

    branch_w : (3, C, C, 5)   stacked Conv1d weights (out, in, k) per branch
    bn_*     : (3C,)          BatchNorm1d(3C) affine params / running stats
    w_ca1    : (3C//2, 3C, 1) ChannelAttention first 1x1 conv weight
    w_ca2    : (3C, 3C//2, 1) ChannelAttention second 1x1 conv weight
    w_head   : (C, 3C, 1)     final 1x1 conv weight
    batch_blocks: grid steps over the batch (use 2 on v7x to feed both TCs;
                  keep 1 on single-TensorCore v5e/v6e).
    """
    B, C, L = x.shape
    assert B % batch_blocks == 0
    sub_batch = B // batch_blocks
    dilations = (1, 2, 3)
    pad = 2 * max(dilations)                 # 6; covers every branch's "same" padding
    Lp = L + 2 * pad

    # Inference-time BatchNorm fold: BN(y) = y*scale + shift, scale folded into
    # the (bias-free) conv weights; only the shift is applied in-kernel.
    scale = (bn_gamma / jnp.sqrt(bn_var + eps)).astype(jnp.float32)   # (3C,)
    shift = (bn_beta - bn_mean * scale).astype(jnp.float32)           # (3C,)
    wb = jnp.transpose(branch_w, (0, 3, 1, 2)).astype(jnp.float32)    # (3, 5, C_out, C_in)
    wb = wb * scale.reshape(3, 1, C, 1)
    wb = wb.reshape(3 * 5, C, C)                                      # [branch*5 + tap]
    bn_shift = shift.reshape(3 * C, 1)

    xp = jnp.pad(x, ((0, 0), (0, 0), (pad, pad)))   # one padded copy; shifts done in-kernel

    w1 = w_ca1[..., 0].astype(jnp.float32)          # (3C//2, 3C)
    w2 = w_ca2[..., 0].astype(jnp.float32)          # (3C, 3C//2)
    wh = w_head[..., 0].astype(jnp.float32)         # (C, 3C)

    kernel = partial(_pdr_kernel, sub_batch=sub_batch, channels=C, length=L,
                     pad=pad, dilations=dilations)

    return pl.pallas_call(
        kernel,
        out_shape=jax.ShapeDtypeStruct((B, C, L), x.dtype),
        grid_spec=pltpu.PrefetchScalarGridSpec(
            num_scalar_prefetch=0,
            grid=(batch_blocks,),
            in_specs=[
                pl.BlockSpec((sub_batch, C, Lp), lambda i: (i, 0, 0)),   # padded x
                pl.BlockSpec((3 * 5, C, C), lambda i: (0, 0, 0)),        # folded branch taps
                pl.BlockSpec((3 * C, 1), lambda i: (0, 0)),              # BN shift
                pl.BlockSpec((3 * C // 2, 3 * C), lambda i: (0, 0)),     # channel-attn 1x1 #1
                pl.BlockSpec((3 * C, 3 * C // 2), lambda i: (0, 0)),     # channel-attn 1x1 #2
                pl.BlockSpec((C, 3 * C), lambda i: (0, 0)),              # head 1x1
            ],
            out_specs=pl.BlockSpec((sub_batch, C, L), lambda i: (i, 0, 0)),
            scratch_shapes=[pltpu.VMEM((3 * C, L), jnp.float32)],
        ),
        compiler_params=pltpu.CompilerParams(dimension_semantics=("parallel",)),
    )(xp, wb, bn_shift, w1, w2, wh)


def parallel_dilation_res_ref(x, branch_w, bn_gamma, bn_beta, bn_mean, bn_var,
                              w_ca1, w_ca2, w_head, *, eps=1e-5):
    """Pure-JAX reference mirroring the PyTorch module (eval mode)."""
    dil = (1, 2, 3)

    def conv1d(inp, w, d, p):
        return lax.conv_general_dilated(
            inp, w, window_strides=(1,), padding=[(p, p)], rhs_dilation=(d,),
            dimension_numbers=("NCH", "OIH", "NCH"))

    y = jnp.concatenate([conv1d(x, branch_w[i], dil[i], 2 * dil[i]) for i in range(3)],
                        axis=1)                                       # (B, 3C, L)
    y = (y - bn_mean[None, :, None]) / jnp.sqrt(bn_var + eps)[None, :, None] \
        * bn_gamma[None, :, None] + bn_beta[None, :, None]            # BatchNorm (eval)
    y = y * jax.nn.sigmoid(y)                                         # Swish
    pooled = jnp.mean(y, axis=2, keepdims=True)                       # AdaptiveAvgPool1d(1)
    a = jnp.einsum("oc,bcl->bol", w_ca1[..., 0], pooled)
    a = jnp.where(a > 0, a, 0.01 * a)                                 # LeakyReLU(0.01)
    a = jax.nn.sigmoid(jnp.einsum("oc,bcl->bol", w_ca2[..., 0], a))
    y = y * a                                                         # ChannelAttention
    h = jnp.einsum("oc,bcl->bol", w_head[..., 0], y)                  # head 1x1 conv
    z = x + h
    return (z * jax.nn.sigmoid(z)).astype(x.dtype)                    # residual + Swish


if __name__ == "__main__":
    B, C, L = 2, 8, 128        # batch, channels, sequence length (L=128 -> lane-dense stores)

    key = jax.random.PRNGKey(0)
    keys = jax.random.split(key, 9)

    x = jax.random.normal(keys[0], (B, C, L), dtype=jnp.float32)
    branch_w = 0.1 * jax.random.normal(keys[1], (3, C, C, 5), dtype=jnp.float32)
    bn_gamma = 1.0 + 0.1 * jax.random.normal(keys[2], (3 * C,), dtype=jnp.float32)
    bn_beta = 0.1 * jax.random.normal(keys[3], (3 * C,), dtype=jnp.float32)
    bn_mean = 0.1 * jax.random.normal(keys[4], (3 * C,), dtype=jnp.float32)
    bn_var = jax.random.uniform(keys[5], (3 * C,), minval=0.5, maxval=1.5, dtype=jnp.float32)
    w_ca1 = 0.2 * jax.random.normal(keys[6], (3 * C // 2, 3 * C, 1), dtype=jnp.float32)
    w_ca2 = 0.2 * jax.random.normal(keys[7], (3 * C, 3 * C // 2, 1), dtype=jnp.float32)
    w_head = 0.2 * jax.random.normal(keys[8], (C, 3 * C, 1), dtype=jnp.float32)

    out = parallel_dilation_res(x, branch_w, bn_gamma, bn_beta, bn_mean, bn_var,
                                w_ca1, w_ca2, w_head)
    out = jax.block_until_ready(out)

    ref = parallel_dilation_res_ref(x, branch_w, bn_gamma, bn_beta, bn_mean, bn_var,
                                    w_ca1, w_ca2, w_head)
    assert out.shape == (B, C, L)
    max_err = jnp.max(jnp.abs(out - ref))
    assert jnp.allclose(out, ref, atol=1e-4, rtol=1e-4), f"mismatch vs reference: {max_err}"

    print("KERNEL_OK")
</pallas_src>

<mosaic_0001>
module attributes {stable_mosaic.version = 11 : i64} {
  func.func @_pdr_kernel(%arg0: i32, %arg1: memref<2x8x140xf32, #tpu.memory_space<vmem>>, %arg2: memref<15x8x8xf32, #tpu.memory_space<vmem>>, %arg3: memref<24x1xf32, #tpu.memory_space<vmem>>, %arg4: memref<12x24xf32, #tpu.memory_space<vmem>>, %arg5: memref<24x12xf32, #tpu.memory_space<vmem>>, %arg6: memref<8x24xf32, #tpu.memory_space<vmem>>, %arg7: memref<2x8x128xf32, #tpu.memory_space<vmem>>, %arg8: memref<24x128xf32, #tpu.memory_space<vmem>>) attributes {dimension_semantics = [#tpu.dimension_semantics<parallel>], iteration_bounds = array<i64: 1>, scalar_prefetch = 0 : i64, scratch_operands = 1 : i64, tpu.core_type = #tpu.core_type<tc>, window_params = [{transform_indices = @transform_0, window_bounds = array<i64: 2, 8, 140>}, {pipeline_mode = #tpu.pipeline_mode<synchronous>, transform_indices = @transform_1, window_bounds = array<i64: 15, 8, 8>}, {pipeline_mode = #tpu.pipeline_mode<synchronous>, transform_indices = @transform_2, window_bounds = array<i64: 24, 1>}, {pipeline_mode = #tpu.pipeline_mode<synchronous>, transform_indices = @transform_3, window_bounds = array<i64: 12, 24>}, {pipeline_mode = #tpu.pipeline_mode<synchronous>, transform_indices = @transform_4, window_bounds = array<i64: 24, 12>}, {pipeline_mode = #tpu.pipeline_mode<synchronous>, transform_indices = @transform_5, window_bounds = array<i64: 8, 24>}, {transform_indices = @transform_6, window_bounds = array<i64: 2, 8, 128>}]} {
    %c0 = arith.constant 0 : index
    %c0_0 = arith.constant 0 : index
    %0 = vector.load %arg3[%c0, %c0_0] : memref<24x1xf32, #tpu.memory_space<vmem>>, vector<24x1xf32>
    %c0_1 = arith.constant 0 : index
    %c0_2 = arith.constant 0 : index
    %1 = vector.load %arg4[%c0_1, %c0_2] : memref<12x24xf32, #tpu.memory_space<vmem>>, vector<12x24xf32>
    %c0_3 = arith.constant 0 : index
    %c0_4 = arith.constant 0 : index
    %2 = vector.load %arg5[%c0_3, %c0_4] : memref<24x12xf32, #tpu.memory_space<vmem>>, vector<24x12xf32>
    %c0_5 = arith.constant 0 : index
    %c0_6 = arith.constant 0 : index
    %3 = vector.load %arg6[%c0_5, %c0_6] : memref<8x24xf32, #tpu.memory_space<vmem>>, vector<8x24xf32>
    %c0_7 = arith.constant 0 : index
    %c0_8 = arith.constant 0 : index
    %c0_9 = arith.constant 0 : index
    %4 = vector.load %arg1[%c0_7, %c0_8, %c0_9] : memref<2x8x140xf32, #tpu.memory_space<vmem>>, vector<1x8x140xf32>
    %5 = vector.shape_cast %4 : vector<1x8x140xf32> to vector<8x140xf32>
    %cst = arith.constant 0.000000e+00 : f32
    %6 = vector.broadcast %cst : f32 to vector<8x128xf32>
    %c0_10 = arith.constant 0 : index
    %c0_11 = arith.constant 0 : index
    %c0_12 = arith.constant 0 : index
    %7 = vector.load %arg2[%c0_10, %c0_11, %c0_12] : memref<15x8x8xf32, #tpu.memory_space<vmem>>, vector<1x8x8xf32>
    %8 = vector.shape_cast %7 : vector<1x8x8xf32> to vector<8x8xf32>
    %9 = vector.extract_strided_slice %5 {offsets = [0, 4], sizes = [8, 128], strides = [1, 1]} : vector<8x140xf32> to vector<8x128xf32>
    %cst_13 = arith.constant dense<0.000000e+00> : vector<8x128xf32>
    %10 = tpu.matmul %8, %9, %cst_13 {dimension_numbers = #tpu.dot_dimension_numbers<[1], [0], [0], [1], [0, 0, 1, 1], [], []>} : vector<8x8xf32>, vector<8x128xf32>, vector<8x128xf32> -> vector<8x128xf32>
    %11 = arith.addf %6, %10 : vector<8x128xf32>
    %c1 = arith.constant 1 : index
    %c0_14 = arith.constant 0 : index
    %c0_15 = arith.constant 0 : index
    %12 = vector.load %arg2[%c1, %c0_14, %c0_15] : memref<15x8x8xf32, #tpu.memory_space<vmem>>, vector<1x8x8xf32>
    %13 = vector.shape_cast %12 : vector<1x8x8xf32> to vector<8x8xf32>
    %14 = vector.extract_strided_slice %5 {offsets = [0, 5], sizes = [8, 128], strides = [1, 1]} : vector<8x140xf32> to vector<8x128xf32>
    %cst_16 = arith.constant dense<0.000000e+00> : vector<8x128xf32>
    %15 = tpu.matmul %13, %14, %cst_16 {dimension_numbers = #tpu.dot_dimension_numbers<[1], [0], [0], [1], [0, 0, 1, 1], [], []>} : vector<8x8xf32>, vector<8x128xf32>, vector<8x128xf32> -> vector<8x128xf32>
    %16 = arith.addf %11, %15 : vector<8x128xf32>
    %c2 = arith.constant 2 : index
    %c0_17 = arith.constant 0 : index
    %c0_18 = arith.constant 0 : index
    %17 = vector.load %arg2[%c2, %c0_17, %c0_18] : memref<15x8x8xf32, #tpu.memory_space<vmem>>, vector<1x8x8xf32>
    %18 = vector.shape_cast %17 : vector<1x8x8xf32> to vector<8x8xf32>
    %19 = vector.extract_strided_slice %5 {offsets = [0, 6], sizes = [8, 128], strides = [1, 1]} : vector<8x140xf32> to vector<8x128xf32>
    %cst_19 = arith.constant dense<0.000000e+00> : vector<8x128xf32>
    %20 = tpu.matmul %18, %19, %cst_19 {dimension_numbers = #tpu.dot_dimension_numbers<[1], [0], [0], [1], [0, 0, 1, 1], [], []>} : vector<8x8xf32>, vector<8x128xf32>, vector<8x128xf32> -> vector<8x128xf32>
    %21 = arith.addf %16, %20 : vector<8x128xf32>
    %c3 = arith.constant 3 : index
    %c0_20 = arith.constant 0 : index
    %c0_21 = arith.constant 0 : index
    %22 = vector.load %arg2[%c3, %c0_20, %c0_21] : memref<15x8x8xf32, #tpu.memory_space<vmem>>, vector<1x8x8xf32>
    %23 = vector.shape_cast %22 : vector<1x8x8xf32> to vector<8x8xf32>
    %24 = vector.extract_strided_slice %5 {offsets = [0, 7], sizes = [8, 128], strides = [1, 1]} : vector<8x140xf32> to vector<8x128xf32>
    %cst_22 = arith.constant dense<0.000000e+00> : vector<8x128xf32>
    %25 = tpu.matmul %23, %24, %cst_22 {dimension_numbers = #tpu.dot_dimension_numbers<[1], [0], [0], [1], [0, 0, 1, 1], [], []>} : vector<8x8xf32>, vector<8x128xf32>, vector<8x128xf32> -> vector<8x128xf32>
    %26 = arith.addf %21, %25 : vector<8x128xf32>
    %c4 = arith.constant 4 : index
    %c0_23 = arith.constant 0 : index
    %c0_24 = arith.constant 0 : index
    %27 = vector.load %arg2[%c4, %c0_23, %c0_24] : memref<15x8x8xf32, #tpu.memory_space<vmem>>, vector<1x8x8xf32>
    %28 = vector.shape_cast %27 : vector<1x8x8xf32> to vector<8x8xf32>
    %29 = vector.extract_strided_slice %5 {offsets = [0, 8], sizes = [8, 128], strides = [1, 1]} : vector<8x140xf32> to vector<8x128xf32>
    %cst_25 = arith.constant dense<0.000000e+00> : vector<8x128xf32>
    %30 = tpu.matmul %28, %29, %cst_25 {dimension_numbers = #tpu.dot_dimension_numbers<[1], [0], [0], [1], [0, 0, 1, 1], [], []>} : vector<8x8xf32>, vector<8x128xf32>, vector<8x128xf32> -> vector<8x128xf32>
    %31 = arith.addf %26, %30 : vector<8x128xf32>
    %32 = vector.extract_strided_slice %0 {offsets = [0, 0], sizes = [8, 1], strides = [1, 1]} : vector<24x1xf32> to vector<8x1xf32>
    %33 = vector.broadcast %32 : vector<8x1xf32> to vector<8x128xf32>
    %34 = arith.addf %31, %33 : vector<8x128xf32>
    %cst_26 = arith.constant 0.000000e+00 : f32
    %35 = vector.broadcast %cst_26 : f32 to vector<8x128xf32>
    %36 = arith.subf %35, %34 : vector<8x128xf32>
    %37 = math.exp %36 : vector<8x128xf32>
    %cst_27 = arith.constant 1.000000e+00 : f32
    %38 = vector.broadcast %cst_27 : f32 to vector<8x128xf32>
    %39 = arith.addf %38, %37 : vector<8x128xf32>
    %cst_28 = arith.constant 1.000000e+00 : f32
    %40 = vector.broadcast %cst_28 : f32 to vector<8x128xf32>
    %41 = arith.divf %40, %39 : vector<8x128xf32>
    %42 = arith.mulf %34, %41 : vector<8x128xf32>
    %c0_29 = arith.constant 0 : index
    %c0_30 = arith.constant 0 : index
    %43 = vector.load %arg8[%c0_29, %c0_30] : memref<24x128xf32, #tpu.memory_space<vmem>>, vector<8x128xf32>
    tpu.vector_store %arg8[%c0_29, %c0_30], %42 {strides = array<i32>} : memref<24x128xf32, #tpu.memory_space<vmem>>, vector<8x128xf32>,
    %cst_31 = arith.constant 0.000000e+00 : f32
    %44 = vector.broadcast %cst_31 : f32 to vector<8x128xf32>
    %c5 = arith.constant 5 : index
    %c0_32 = arith.constant 0 : index
    %c0_33 = arith.constant 0 : index
    %45 = vector.load %arg2[%c5, %c0_32, %c0_33] : memref<15x8x8xf32, #tpu.memory_space<vmem>>, vector<1x8x8xf32>
    %46 = vector.shape_cast %45 : vector<1x8x8xf32> to vector<8x8xf32>
    %47 = vector.extract_strided_slice %5 {offsets = [0, 2], sizes = [8, 128], strides = [1, 1]} : vector<8x140xf32> to vector<8x128xf32>
    %cst_34 = arith.constant dense<0.000000e+00> : vector<8x128xf32>
    %48 = tpu.matmul %46, %47, %cst_34 {dimension_numbers = #tpu.dot_dimension_numbers<[1], [0], [0], [1], [0, 0, 1, 1], [], []>} : vector<8x8xf32>, vector<8x128xf32>, vector<8x128xf32> -> vector<8x128xf32>
    %49 = arith.addf %44, %48 : vector<8x128xf32>
    %c6 = arith.constant 6 : index
    %c0_35 = arith.constant 0 : index
    %c0_36 = arith.constant 0 : index
    %50 = vector.load %arg2[%c6, %c0_35, %c0_36] : memref<15x8x8xf32, #tpu.memory_space<vmem>>, vector<1x8x8xf32>
    %51 = vector.shape_cast %50 : vector<1x8x8xf32> to vector<8x8xf32>
    %52 = vector.extract_strided_slice %5 {offsets = [0, 4], sizes = [8, 128], strides = [1, 1]} : vector<8x140xf32> to vector<8x128xf32>
    %cst_37 = arith.constant dense<0.000000e+00> : vector<8x128xf32>
    %53 = tpu.matmul %51, %52, %cst_37 {dimension_numbers = #tpu.dot_dimension_numbers<[1], [0], [0], [1], [0, 0, 1, 1], [], []>} : vector<8x8xf32>, vector<8x128xf32>, vector<8x128xf32> -> vector<8x128xf32>
    %54 = arith.addf %49, %53 : vector<8x128xf32>
    %c7 = arith.constant 7 : index
    %c0_38 = arith.constant 0 : index
    %c0_39 = arith.constant 0 : index
    %55 = vector.load %arg2[%c7, %c0_38, %c0_39] : memref<15x8x8xf32, #tpu.memory_space<vmem>>, vector<1x8x8xf32>
    %56 = vector.shape_cast %55 : vector<1x8x8xf32> to vector<8x8xf32>
    %57 = vector.extract_strided_slice %5 {offsets = [0, 6], sizes = [8, 128], strides = [1, 1]} : vector<8x140xf32> to vector<8x128xf32>
    %cst_40 = arith.constant dense<0.000000e+00> : vector<8x128xf32>
    %58 = tpu.matmul %56, %57, %cst_40 {dimension_numbers = #tpu.dot_dimension_numbers<[1], [0], [0], [1], [0, 0, 1, 1], [], []>} : vector<8x8xf32>, vector<8x128xf32>, vector<8x128xf32> -> vector<8x128xf32>
    %59 = arith.addf %54, %58 : vector<8x128xf32>
    %c8 = arith.constant 8 : index
    %c0_41 = arith.constant 0 : index
    %c0_42 = arith.constant 0 : index
    %60 = vector.load %arg2[%c8, %c0_41, %c0_42] : memref<15x8x8xf32, #tpu.memory_space<vmem>>, vector<1x8x8xf32>
    %61 = vector.shape_cast %60 : vector<1x8x8xf32> to vector<8x8xf32>
    %62 = vector.extract_strided_slice %5 {offsets = [0, 8], sizes = [8, 128], strides = [1, 1]} : vector<8x140xf32> to vector<8x128xf32>
    %cst_43 = arith.constant dense<0.000000e+00> : vector<8x128xf32>
    %63 = tpu.matmul %61, %62, %cst_43 {dimension_numbers = #tpu.dot_dimension_numbers<[1], [0], [0], [1], [0, 0, 1, 1], [], []>} : vector<8x8xf32>, vector<8x128xf32>, vector<8x128xf32> -> vector<8x128xf32>
    %64 = arith.addf %59, %63 : vector<8x128xf32>
    %c9 = arith.constant 9 : index
    %c0_44 = arith.constant 0 : index
    %c0_45 = arith.constant 0 : index
    %65 = vector.load %arg2[%c9, %c0_44, %c0_45] : memref<15x8x8xf32, #tpu.memory_space<vmem>>, vector<1x8x8xf32>
    %66 = vector.shape_cast %65 : vector<1x8x8xf32> to vector<8x8xf32>
    %67 = vector.extract_strided_slice %5 {offsets = [0, 10], sizes = [8, 128], strides = [1, 1]} : vector<8x140xf32> to vector<8x128xf32>
    %cst_46 = arith.constant dense<0.000000e+00> : vector<8x128xf32>
    %68 = tpu.matmul %66, %67, %cst_46 {dimension_numbers = #tpu.dot_dimension_numbers<[1], [0], [0], [1], [0, 0, 1, 1], [], []>} : vector<8x8xf32>, vector<8x128xf32>, vector<8x128xf32> -> vector<8x128xf32>
    %69 = arith.addf %64, %68 : vector<8x128xf32>
    %70 = vector.extract_strided_slice %0 {offsets = [8, 0], sizes = [8, 1], strides = [1, 1]} : vector<24x1xf32> to vector<8x1xf32>
    %71 = vector.broadcast %70 : vector<8x1xf32> to vector<8x128xf32>
    %72 = arith.addf %69, %71 : vector<8x128xf32>
    %cst_47 = arith.constant 0.000000e+00 : f32
    %73 = vector.broadcast %cst_47 : f32 to vector<8x128xf32>
    %74 = arith.subf %73, %72 : vector<8x128xf32>
    %75 = math.exp %74 : vector<8x128xf32>
    %cst_48 = arith.constant 1.000000e+00 : f32
    %76 = vector.broadcast %cst_48 : f32 to vector<8x128xf32>
    %77 = arith.addf %76, %75 : vector<8x128xf32>
    %cst_49 = arith.constant 1.000000e+00 : f32
    %78 = vector.broadcast %cst_49 : f32 to vector<8x128xf32>
    %79 = arith.divf %78, %77 : vector<8x128xf32>
    %80 = arith.mulf %72, %79 : vector<8x128xf32>
    %c8_50 = arith.constant 8 : index
    %c0_51 = arith.constant 0 : index
    %81 = vector.load %arg8[%c8_50, %c0_51] : memref<24x128xf32, #tpu.memory_space<vmem>>, vector<8x128xf32>
    tpu.vector_store %arg8[%c8_50, %c0_51], %80 {strides = array<i32>} : memref<24x128xf32, #tpu.memory_space<vmem>>, vector<8x128xf32>,
    %cst_52 = arith.constant 0.000000e+00 : f32
    %82 = vector.broadcast %cst_52 : f32 to vector<8x128xf32>
    %c10 = arith.constant 10 : index
    %c0_53 = arith.constant 0 : index
    %c0_54 = arith.constant 0 : index
    %83 = vector.load %arg2[%c10, %c0_53, %c0_54] : memref<15x8x8xf32, #tpu.memory_space<vmem>>, vector<1x8x8xf32>
    %84 = vector.shape_cast %83 : vector<1x8x8xf32> to vector<8x8xf32>
    %85 = vector.extract_strided_slice %5 {offsets = [0, 0], sizes = [8, 128], strides = [1, 1]} : vector<8x140xf32> to vector<8x128xf32>
    %cst_55 = arith.constant dense<0.000000e+00> : vector<8x128xf32>
    %86 = tpu.matmul %84, %85, %cst_55 {dimension_numbers = #tpu.dot_dimension_numbers<[1], [0], [0], [1], [0, 0, 1, 1], [], []>} : vector<8x8xf32>, vector<8x128xf32>, vector<8x128xf32> -> vector<8x128xf32>
    %87 = arith.addf %82, %86 : vector<8x128xf32>
    %c11 = arith.constant 11 : index
    %c0_56 = arith.constant 0 : index
    %c0_57 = arith.constant 0 : index
    %88 = vector.load %arg2[%c11, %c0_56, %c0_57] : memref<15x8x8xf32, #tpu.memory_space<vmem>>, vector<1x8x8xf32>
    %89 = vector.shape_cast %88 : vector<1x8x8xf32> to vector<8x8xf32>
    %90 = vector.extract_strided_slice %5 {offsets = [0, 3], sizes = [8, 128], strides = [1, 1]} : vector<8x140xf32> to vector<8x128xf32>
    %cst_58 = arith.constant dense<0.000000e+00> : vector<8x128xf32>
    %91 = tpu.matmul %89, %90, %cst_58 {dimension_numbers = #tpu.dot_dimension_numbers<[1], [0], [0], [1], [0, 0, 1, 1], [], []>} : vector<8x8xf32>, vector<8x128xf32>, vector<8x128xf32> -> vector<8x128xf32>
    %92 = arith.addf %87, %91 : vector<8x128xf32>
    %c12 = arith.constant 12 : index
    %c0_59 = arith.constant 0 : index
    %c0_60 = arith.constant 0 : index
    %93 = vector.load %arg2[%c12, %c0_59, %c0_60] : memref<15x8x8xf32, #tpu.memory_space<vmem>>, vector<1x8x8xf32>
    %94 = vector.shape_cast %93 : vector<1x8x8xf32> to vector<8x8xf32>
    %95 = vector.extract_strided_slice %5 {offsets = [0, 6], sizes = [8, 128], strides = [1, 1]} : vector<8x140xf32> to vector<8x128xf32>
    %cst_61 = arith.constant dense<0.000000e+00> : vector<8x128xf32>
    %96 = tpu.matmul %94, %95, %cst_61 {dimension_numbers = #tpu.dot_dimension_numbers<[1], [0], [0], [1], [0, 0, 1, 1], [], []>} : vector<8x8xf32>, vector<8x128xf32>, vector<8x128xf32> -> vector<8x128xf32>
    %97 = arith.addf %92, %96 : vector<8x128xf32>
    %c13 = arith.constant 13 : index
    %c0_62 = arith.constant 0 : index
    %c0_63 = arith.constant 0 : index
    %98 = vector.load %arg2[%c13, %c0_62, %c0_63] : memref<15x8x8xf32, #tpu.memory_space<vmem>>, vector<1x8x8xf32>
    %99 = vector.shape_cast %98 : vector<1x8x8xf32> to vector<8x8xf32>
    %100 = vector.extract_strided_slice %5 {offsets = [0, 9], sizes = [8, 128], strides = [1, 1]} : vector<8x140xf32> to vector<8x128xf32>
    %cst_64 = arith.constant dense<0.000000e+00> : vector<8x128xf32>
    %101 = tpu.matmul %99, %100, %cst_64 {dimension_numbers = #tpu.dot_dimension_numbers<[1], [0], [0], [1], [0, 0, 1, 1], [], []>} : vector<8x8xf32>, vector<8x128xf32>, vector<8x128xf32> -> vector<8x128xf32>
    %102 = arith.addf %97, %101 : vector<8x128xf32>
    %c14 = arith.constant 14 : index
    %c0_65 = arith.constant 0 : index
    %c0_66 = arith.constant 0 : index
    %103 = vector.load %arg2[%c14, %c0_65, %c0_66] : memref<15x8x8xf32, #tpu.memory_space<vmem>>, vector<1x8x8xf32>
    %104 = vector.shape_cast %103 : vector<1x8x8xf32> to vector<8x8xf32>
    %105 = vector.extract_strided_slice %5 {offsets = [0, 12], sizes = [8, 128], strides = [1, 1]} : vector<8x140xf32> to vector<8x128xf32>
    %cst_67 = arith.constant dense<0.000000e+00> : vector<8x128xf32>
    %106 = tpu.matmul %104, %105, %cst_67 {dimension_numbers = #tpu.dot_dimension_numbers<[1], [0], [0], [1], [0, 0, 1, 1], [], []>} : vector<8x8xf32>, vector<8x128xf32>, vector<8x128xf32> -> vector<8x128xf32>
    %107 = arith.addf %102, %106 : vector<8x128xf32>
    %108 = vector.extract_strided_slice %0 {offsets = [16, 0], sizes = [8, 1], strides = [1, 1]} : vector<24x1xf32> to vector<8x1xf32>
    %109 = vector.broadcast %108 : vector<8x1xf32> to vector<8x128xf32>
    %110 = arith.addf %107, %109 : vector<8x128xf32>
    %cst_68 = arith.constant 0.000000e+00 : f32
    %111 = vector.broadcast %cst_68 : f32 to vector<8x128xf32>
    %112 = arith.subf %111, %110 : vector<8x128xf32>
    %113 = math.exp %112 : vector<8x128xf32>
    %cst_69 = arith.constant 1.000000e+00 : f32
    %114 = vector.broadcast %cst_69 : f32 to vector<8x128xf32>
    %115 = arith.addf %114, %113 : vector<8x128xf32>
    %cst_70 = arith.constant 1.000000e+00 : f32
    %116 = vector.broadcast %cst_70 : f32 to vector<8x128xf32>
    %117 = arith.divf %116, %115 : vector<8x128xf32>
    %118 = arith.mulf %110, %117 : vector<8x128xf32>
    %c16 = arith.constant 16 : index
    %c0_71 = arith.constant 0 : index
    %119 = vector.load %arg8[%c16, %c0_71] : memref<24x128xf32, #tpu.memory_space<vmem>>, vector<8x128xf32>
    tpu.vector_store %arg8[%c16, %c0_71], %118 {strides = array<i32>} : memref<24x128xf32, #tpu.memory_space<vmem>>, vector<8x128xf32>,
    %c0_72 = arith.constant 0 : index
    %c0_73 = arith.constant 0 : index
    %120 = vector.load %arg8[%c0_72, %c0_73] : memref<24x128xf32, #tpu.memory_space<vmem>>, vector<24x128xf32>
    %cst_74 = arith.constant dense<0.000000e+00> : vector<24xf32>
    %121 = vector.multi_reduction <add>, %120, %cst_74 [1] : vector<24x128xf32> to vector<24xf32>
    %122 = vector.shape_cast %121 : vector<24xf32> to vector<24x1xf32>
    %cst_75 = arith.constant 7.812500e-03 : f32
    %123 = vector.broadcast %cst_75 : f32 to vector<24x1xf32>
    %124 = arith.mulf %122, %123 : vector<24x1xf32>
    %cst_76 = arith.constant dense<0.000000e+00> : vector<12x1xf32>
    %125 = tpu.matmul %1, %124, %cst_76 {dimension_numbers = #tpu.dot_dimension_numbers<[1], [0], [0], [1], [0, 0, 1, 1], [], []>} : vector<12x24xf32>, vector<24x1xf32>, vector<12x1xf32> -> vector<12x1xf32>
    %cst_77 = arith.constant 0.000000e+00 : f32
    %126 = vector.broadcast %cst_77 : f32 to vector<12x1xf32>
    %127 = arith.cmpf ogt, %125, %126 : vector<12x1xf32>
    %cst_78 = arith.constant 0.00999999977 : f32
    %128 = vector.broadcast %cst_78 : f32 to vector<12x1xf32>
    %129 = arith.mulf %128, %125 : vector<12x1xf32>
    %130 = arith.select %127, %125, %129 : vector<12x1xi1>, vector<12x1xf32>
    %cst_79 = arith.constant dense<0.000000e+00> : vector<24x1xf32>
    %131 = tpu.matmul %2, %130, %cst_79 {dimension_numbers = #tpu.dot_dimension_numbers<[1], [0], [0], [1], [0, 0, 1, 1], [], []>} : vector<24x12xf32>, vector<12x1xf32>, vector<24x1xf32> -> vector<24x1xf32>
    %cst_80 = arith.constant 0.000000e+00 : f32
    %132 = vector.broadcast %cst_80 : f32 to vector<24x1xf32>
    %133 = arith.subf %132, %131 : vector<24x1xf32>
    %134 = math.exp %133 : vector<24x1xf32>
    %cst_81 = arith.constant 1.000000e+00 : f32
    %135 = vector.broadcast %cst_81 : f32 to vector<24x1xf32>
    %136 = arith.addf %135, %134 : vector<24x1xf32>
    %cst_82 = arith.constant 1.000000e+00 : f32
    %137 = vector.broadcast %cst_82 : f32 to vector<24x1xf32>
    %138 = arith.divf %137, %136 : vector<24x1xf32>
    %139 = vector.broadcast %138 : vector<24x1xf32> to vector<24x128xf32>
    %140 = arith.mulf %120, %139 : vector<24x128xf32>
    %cst_83 = arith.constant dense<0.000000e+00> : vector<8x128xf32>
    %141 = tpu.matmul %3, %140, %cst_83 {dimension_numbers = #tpu.dot_dimension_numbers<[1], [0], [0], [1], [0, 0, 1, 1], [], []>} : vector<8x24xf32>, vector<24x128xf32>, vector<8x128xf32> -> vector<8x128xf32>
    %142 = vector.extract_strided_slice %5 {offsets = [0, 6], sizes = [8, 128], strides = [1, 1]} : vector<8x140xf32> to vector<8x128xf32>
    %143 = arith.addf %142, %141 : vector<8x128xf32>
    %cst_84 = arith.constant 0.000000e+00 : f32
    %144 = vector.broadcast %cst_84 : f32 to vector<8x128xf32>
    %145 = arith.subf %144, %143 : vector<8x128xf32>
    %146 = math.exp %145 : vector<8x128xf32>
    %cst_85 = arith.constant 1.000000e+00 : f32
    %147 = vector.broadcast %cst_85 : f32 to vector<8x128xf32>
    %148 = arith.addf %147, %146 : vector<8x128xf32>
    %cst_86 = arith.constant 1.000000e+00 : f32
    %149 = vector.broadcast %cst_86 : f32 to vector<8x128xf32>
    %150 = arith.divf %149, %148 : vector<8x128xf32>
    %151 = arith.mulf %143, %150 : vector<8x128xf32>
    %c0_87 = arith.constant 0 : index
    %c0_88 = arith.constant 0 : index
    %c0_89 = arith.constant 0 : index
    %152 = vector.load %arg7[%c0_87, %c0_88, %c0_89] : memref<2x8x128xf32, #tpu.memory_space<vmem>>, vector<1x8x128xf32>
    %153 = vector.shape_cast %152 : vector<1x8x128xf32> to vector<8x128xf32>
    %154 = vector.shape_cast %151 : vector<8x128xf32> to vector<1x8x128xf32>
    tpu.vector_store %arg7[%c0_87, %c0_88, %c0_89], %154 {strides = array<i32>} : memref<2x8x128xf32, #tpu.memory_space<vmem>>, vector<1x8x128xf32>,
    %c1_90 = arith.constant 1 : index
    %c0_91 = arith.constant 0 : index
    %c0_92 = arith.constant 0 : index
    %155 = vector.load %arg1[%c1_90, %c0_91, %c0_92] : memref<2x8x140xf32, #tpu.memory_space<vmem>>, vector<1x8x140xf32>
    %156 = vector.shape_cast %155 : vector<1x8x140xf32> to vector<8x140xf32>
    %cst_93 = arith.constant 0.000000e+00 : f32
    %157 = vector.broadcast %cst_93 : f32 to vector<8x128xf32>
    %c0_94 = arith.constant 0 : index
    %c0_95 = arith.constant 0 : index
    %c0_96 = arith.constant 0 : index
    %158 = vector.load %arg2[%c0_94, %c0_95, %c0_96] : memref<15x8x8xf32, #tpu.memory_space<vmem>>, vector<1x8x8xf32>
    %159 = vector.shape_cast %158 : vector<1x8x8xf32> to vector<8x8xf32>
    %160 = vector.extract_strided_slice %156 {offsets = [0, 4], sizes = [8, 128], strides = [1, 1]} : vector<8x140xf32> to vector<8x128xf32>
    %cst_97 = arith.constant dense<0.000000e+00> : vector<8x128xf32>
    %161 = tpu.matmul %159, %160, %cst_97 {dimension_numbers = #tpu.dot_dimension_numbers<[1], [0], [0], [1], [0, 0, 1, 1], [], []>} : vector<8x8xf32>, vector<8x128xf32>, vector<8x128xf32> -> vector<8x128xf32>
    %162 = arith.addf %157, %161 : vector<8x128xf32>
    %c1_98 = arith.constant 1 : index
    %c0_99 = arith.constant 0 : index
    %c0_100 = arith.constant 0 : index
    %163 = vector.load %arg2[%c1_98, %c0_99, %c0_100] : memref<15x8x8xf32, #tpu.memory_space<vmem>>, vector<1x8x8xf32>
    %164 = vector.shape_cast %163 : vector<1x8x8xf32> to vector<8x8xf32>
    %165 = vector.extract_strided_slice %156 {offsets = [0, 5], sizes = [8, 128], strides = [1, 1]} : vector<8x140xf32> to vector<8x128xf32>
    %cst_101 = arith.constant dense<0.000000e+00> : vector<8x128xf32>
    %166 = tpu.matmul %164, %165, %cst_101 {dimension_numbers = #tpu.dot_dimension_numbers<[1], [0], [0], [1], [0, 0, 1, 1], [], []>} : vector<8x8xf32>, vector<8x128xf32>, vector<8x128xf32> -> vector<8x128xf32>
    %167 = arith.addf %162, %166 : vector<8x128xf32>
    %c2_102 = arith.constant 2 : index
    %c0_103 = arith.constant 0 : index
    %c0_104 = arith.constant 0 : index
    %168 = vector.load %arg2[%c2_102, %c0_103, %c0_104] : memref<15x8x8xf32, #tpu.memory_space<vmem>>, vector<1x8x8xf32>
    %169 = vector.shape_cast %168 : vector<1x8x8xf32> to vector<8x8xf32>
    %170 = vector.extract_strided_slice %156 {offsets = [0, 6], sizes = [8, 128], strides = [1, 1]} : vector<8x140xf32> to vector<8x128xf32>
    %cst_105 = arith.constant dense<0.000000e+00> : vector<8x128xf32>
    %171 = tpu.matmul %169, %170, %cst_105 {dimension_numbers = #tpu.dot_dimension_numbers<[1], [0], [0], [1], [0, 0, 1, 1], [], []>} : vector<8x8xf32>, vector<8x128xf32>, vector<8x128xf32> -> vector<8x128xf32>
    %172 = arith.addf %167, %171 : vector<8x128xf32>
    %c3_106 = arith.constant 3 : index
    %c0_107 = arith.constant 0 : index
    %c0_108 = arith.constant 0 : index
    %173 = vector.load %arg2[%c3_106, %c0_107, %c0_108] : memref<15x8x8xf32, #tpu.memory_space<vmem>>, vector<1x8x8xf32>
    %174 = vector.shape_cast %173 : vector<1x8x8xf32> to vector<8x8xf32>
    %175 = vector.extract_strided_slice %156 {offsets = [0, 7], sizes = [8, 128], strides = [1, 1]} : vector<8x140xf32> to vector<8x128xf32>
    %cst_109 = arith.constant dense<0.000000e+00> : vector<8x128xf32>
    %176 = tpu.matmul %174, %175, %cst_109 {dimension_numbers = #tpu.dot_dimension_numbers<[1], [0], [0], [1], [0, 0, 1, 1], [], []>} : vector<8x8xf32>, vector<8x128xf32>, vector<8x128xf32> -> vector<8x128xf32>
    %177 = arith.addf %172, %176 : vector<8x128xf32>
    %c4_110 = arith.constant 4 : index
    %c0_111 = arith.constant 0 : index
    %c0_112 = arith.constant 0 : index
    %178 = vector.load %arg2[%c4_110, %c0_111, %c0_112] : memref<15x8x8xf32, #tpu.memory_space<vmem>>, vector<1x8x8xf32>
    %179 = vector.shape_cast %178 : vector<1x8x8xf32> to vector<8x8xf32>
    %180 = vector.extract_strided_slice %156 {offsets = [0, 8], sizes = [8, 128], strides = [1, 1]} : vector<8x140xf32> to vector<8x128xf32>
    %cst_113 = arith.constant dense<0.000000e+00> : vector<8x128xf32>
    %181 = tpu.matmul %179, %180, %cst_113 {dimension_numbers = #tpu.dot_dimension_numbers<[1], [0], [0], [1], [0, 0, 1, 1], [], []>} : vector<8x8xf32>, vector<8x128xf32>, vector<8x128xf32> -> vector<8x128xf32>
    %182 = arith.addf %177, %181 : vector<8x128xf32>
    %183 = vector.extract_strided_slice %0 {offsets = [0, 0], sizes = [8, 1], strides = [1, 1]} : vector<24x1xf32> to vector<8x1xf32>
    %184 = vector.broadcast %183 : vector<8x1xf32> to vector<8x128xf32>
    %185 = arith.addf %182, %184 : vector<8x128xf32>
    %cst_114 = arith.constant 0.000000e+00 : f32
    %186 = vector.broadcast %cst_114 : f32 to vector<8x128xf32>
    %187 = arith.subf %186, %185 : vector<8x128xf32>
    %188 = math.exp %187 : vector<8x128xf32>
    %cst_115 = arith.constant 1.000000e+00 : f32
    %189 = vector.broadcast %cst_115 : f32 to vector<8x128xf32>
    %190 = arith.addf %189, %188 : vector<8x128xf32>
    %cst_116 = arith.constant 1.000000e+00 : f32
    %191 = vector.broadcast %cst_116 : f32 to vector<8x128xf32>
    %192 = arith.divf %191, %190 : vector<8x128xf32>
    %193 = arith.mulf %185, %192 : vector<8x128xf32>
    %c0_117 = arith.constant 0 : index
    %c0_118 = arith.constant 0 : index
    %194 = vector.load %arg8[%c0_117, %c0_118] : memref<24x128xf32, #tpu.memory_space<vmem>>, vector<8x128xf32>
    tpu.vector_store %arg8[%c0_117, %c0_118], %193 {strides = array<i32>} : memref<24x128xf32, #tpu.memory_space<vmem>>, vector<8x128xf32>,
    %cst_119 = arith.constant 0.000000e+00 : f32
    %195 = vector.broadcast %cst_119 : f32 to vector<8x128xf32>
    %c5_120 = arith.constant 5 : index
    %c0_121 = arith.constant 0 : index
    %c0_122 = arith.constant 0 : index
    %196 = vector.load %arg2[%c5_120, %c0_121, %c0_122] : memref<15x8x8xf32, #tpu.memory_space<vmem>>, vector<1x8x8xf32>
    %197 = vector.shape_cast %196 : vector<1x8x8xf32> to vector<8x8xf32>
    %198 = vector.extract_strided_slice %156 {offsets = [0, 2], sizes = [8, 128], strides = [1, 1]} : vector<8x140xf32> to vector<8x128xf32>
    %cst_123 = arith.constant dense<0.000000e+00> : vector<8x128xf32>
    %199 = tpu.matmul %197, %198, %cst_123 {dimension_numbers = #tpu.dot_dimension_numbers<[1], [0], [0], [1], [0, 0, 1, 1], [], []>} : vector<8x8xf32>, vector<8x128xf32>, vector<8x128xf32> -> vector<8x128xf32>
    %200 = arith.addf %195, %199 : vector<8x128xf32>
    %c6_124 = arith.constant 6 : index
    %c0_125 = arith.constant 0 : index
    %c0_126 = arith.constant 0 : index
    %201 = vector.load %arg2[%c6_124, %c0_125, %c0_126] : memref<15x8x8xf32, #tpu.memory_space<vmem>>, vector<1x8x8xf32>
    %202 = vector.shape_cast %201 : vector<1x8x8xf32> to vector<8x8xf32>
    %203 = vector.extract_strided_slice %156 {offsets = [0, 4], sizes = [8, 128], strides = [1, 1]} : vector<8x140xf32> to vector<8x128xf32>
    %cst_127 = arith.constant dense<0.000000e+00> : vector<8x128xf32>
    %204 = tpu.matmul %202, %203, %cst_127 {dimension_numbers = #tpu.dot_dimension_numbers<[1], [0], [0], [1], [0, 0, 1, 1], [], []>} : vector<8x8xf32>, vector<8x128xf32>, vector<8x128xf32> -> vector<8x128xf32>
    %205 = arith.addf %200, %204 : vector<8x128xf32>
    %c7_128 = arith.constant 7 : index
    %c0_129 = arith.constant 0 : index
    %c0_130 = arith.constant 0 : index
    %206 = vector.load %arg2[%c7_128, %c0_129, %c0_130] : memref<15x8x8xf32, #tpu.memory_space<vmem>>, vector<1x8x8xf32>
    %207 = vector.shape_cast %206 : vector<1x8x8xf32> to vector<8x8xf32>
    %208 = vector.extract_strided_slice %156 {offsets = [0, 6], sizes = [8, 128], strides = [1, 1]} : vector<8x140xf32> to vector<8x128xf32>
    %cst_131 = arith.constant dense<0.000000e+00> : vector<8x128xf32>
    %209 = tpu.matmul %207, %208, %cst_131 {dimension_numbers = #tpu.dot_dimension_numbers<[1], [0], [0], [1], [0, 0, 1, 1], [], []>} : vector<8x8xf32>, vector<8x128xf32>, vector<8x128xf32> -> vector<8x128xf32>
    %210 = arith.addf %205, %209 : vector<8x128xf32>
    %c8_132 = arith.constant 8 : index
    %c0_133 = arith.constant 0 : index
    %c0_134 = arith.constant 0 : index
    %211 = vector.load %arg2[%c8_132, %c0_133, %c0_134] : memref<15x8x8xf32, #tpu.memory_space<vmem>>, vector<1x8x8xf32>
    %212 = vector.shape_cast %211 : vector<1x8x8xf32> to vector<8x8xf32>
    %213 = vector.extract_strided_slice %156 {offsets = [0, 8], sizes = [8, 128], strides = [1, 1]} : vector<8x140xf32> to vector<8x128xf32>
    %cst_135 = arith.constant dense<0.000000e+00> : vector<8x128xf32>
    %214 = tpu.matmul %212, %213, %cst_135 {dimension_numbers = #tpu.dot_dimension_numbers<[1], [0], [0], [1], [0, 0, 1, 1], [], []>} : vector<8x8xf32>, vector<8x128xf32>, vector<8x128xf32> -> vector<8x128xf32>
    %215 = arith.addf %210, %214 : vector<8x128xf32>
    %c9_136 = arith.constant 9 : index
    %c0_137 = arith.constant 0 : index
    %c0_138 = arith.constant 0 : index
    %216 = vector.load %arg2[%c9_136, %c0_137, %c0_138] : memref<15x8x8xf32, #tpu.memory_space<vmem>>, vector<1x8x8xf32>
    %217 = vector.shape_cast %216 : vector<1x8x8xf32> to vector<8x8xf32>
    %218 = vector.extract_strided_slice %156 {offsets = [0, 10], sizes = [8, 128], strides = [1, 1]} : vector<8x140xf32> to vector<8x128xf32>
    %cst_139 = arith.constant dense<0.000000e+00> : vector<8x128xf32>
    %219 = tpu.matmul %217, %218, %cst_139 {dimension_numbers = #tpu.dot_dimension_numbers<[1], [0], [0], [1], [0, 0, 1, 1], [], []>} : vector<8x8xf32>, vector<8x128xf32>, vector<8x128xf32> -> vector<8x128xf32>
    %220 = arith.addf %215, %219 : vector<8x128xf32>
    %221 = vector.extract_strided_slice %0 {offsets = [8, 0], sizes = [8, 1], strides = [1, 1]} : vector<24x1xf32> to vector<8x1xf32>
    %222 = vector.broadcast %221 : vector<8x1xf32> to vector<8x128xf32>
    %223 = arith.addf %220, %222 : vector<8x128xf32>
    %cst_140 = arith.constant 0.000000e+00 : f32
    %224 = vector.broadcast %cst_140 : f32 to vector<8x128xf32>
    %225 = arith.subf %224, %223 : vector<8x128xf32>
    %226 = math.exp %225 : vector<8x128xf32>
    %cst_141 = arith.constant 1.000000e+00 : f32
    %227 = vector.broadcast %cst_141 : f32 to vector<8x128xf32>
    %228 = arith.addf %227, %226 : vector<8x128xf32>
    %cst_142 = arith.constant 1.000000e+00 : f32
    %229 = vector.broadcast %cst_142 : f32 to vector<8x128xf32>
    %230 = arith.divf %229, %228 : vector<8x128xf32>
    %231 = arith.mulf %223, %230 : vector<8x128xf32>
    %c8_143 = arith.constant 8 : index
    %c0_144 = arith.constant 0 : index
    %232 = vector.load %arg8[%c8_143, %c0_144] : memref<24x128xf32, #tpu.memory_space<vmem>>, vector<8x128xf32>
    tpu.vector_store %arg8[%c8_143, %c0_144], %231 {strides = array<i32>} : memref<24x128xf32, #tpu.memory_space<vmem>>, vector<8x128xf32>,
    %cst_145 = arith.constant 0.000000e+00 : f32
    %233 = vector.broadcast %cst_145 : f32 to vector<8x128xf32>
    %c10_146 = arith.constant 10 : index
    %c0_147 = arith.constant 0 : index
    %c0_148 = arith.constant 0 : index
    %234 = vector.load %arg2[%c10_146, %c0_147, %c0_148] : memref<15x8x8xf32, #tpu.memory_space<vmem>>, vector<1x8x8xf32>
    %235 = vector.shape_cast %234 : vector<1x8x8xf32> to vector<8x8xf32>
    %236 = vector.extract_strided_slice %156 {offsets = [0, 0], sizes = [8, 128], strides = [1, 1]} : vector<8x140xf32> to vector<8x128xf32>
    %cst_149 = arith.constant dense<0.000000e+00> : vector<8x128xf32>
    %237 = tpu.matmul %235, %236, %cst_149 {dimension_numbers = #tpu.dot_dimension_numbers<[1], [0], [0], [1], [0, 0, 1, 1], [], []>} : vector<8x8xf32>, vector<8x128xf32>, vector<8x128xf32> -> vector<8x128xf32>
    %238 = arith.addf %233, %237 : vector<8x128xf32>
    %c11_150 = arith.constant 11 : index
    %c0_151 = arith.constant 0 : index
    %c0_152 = arith.constant 0 : index
    %239 = vector.load %arg2[%c11_150, %c0_151, %c0_152] : memref<15x8x8xf32, #tpu.memory_space<vmem>>, vector<1x8x8xf32>
    %240 = vector.shape_cast %239 : vector<1x8x8xf32> to vector<8x8xf32>
    %241 = vector.extract_strided_slice %156 {offsets = [0, 3], sizes = [8, 128], strides = [1, 1]} : vector<8x140xf32> to vector<8x128xf32>
    %cst_153 = arith.constant dense<0.000000e+00> : vector<8x128xf32>
    %242 = tpu.matmul %240, %241, %cst_153 {dimension_numbers = #tpu.dot_dimension_numbers<[1], [0], [0], [1], [0, 0, 1, 1], [], []>} : vector<8x8xf32>, vector<8x128xf32>, vector<8x128xf32> -> vector<8x128xf32>
    %243 = arith.addf %238, %242 : vector<8x128xf32>
    %c12_154 = arith.constant 12 : index
    %c0_155 = arith.constant 0 : index
    %c0_156 = arith.constant 0 : index
    %244 = vector.load %arg2[%c12_154, %c0_155, %c0_156] : memref<15x8x8xf32, #tpu.memory_space<vmem>>, vector<1x8x8xf32>
    %245 = vector.shape_cast %244 : vector<1x8x8xf32> to vector<8x8xf32>
    %246 = vector.extract_strided_slice %156 {offsets = [0, 6], sizes = [8, 128], strides = [1, 1]} : vector<8x140xf32> to vector<8x128xf32>
    %cst_157 = arith.constant dense<0.000000e+00> : vector<8x128xf32>
    %247 = tpu.matmul %245, %246, %cst_157 {dimension_numbers = #tpu.dot_dimension_numbers<[1], [0], [0], [1], [0, 0, 1, 1], [], []>} : vector<8x8xf32>, vector<8x128xf32>, vector<8x128xf32> -> vector<8x128xf32>
    %248 = arith.addf %243, %247 : vector<8x128xf32>
    %c13_158 = arith.constant 13 : index
    %c0_159 = arith.constant 0 : index
    %c0_160 = arith.constant 0 : index
    %249 = vector.load %arg2[%c13_158, %c0_159, %c0_160] : memref<15x8x8xf32, #tpu.memory_space<vmem>>, vector<1x8x8xf32>
    %250 = vector.shape_cast %249 : vector<1x8x8xf32> to vector<8x8xf32>
    %251 = vector.extract_strided_slice %156 {offsets = [0, 9], sizes = [8, 128], strides = [1, 1]} : vector<8x140xf32> to vector<8x128xf32>
    %cst_161 = arith.constant dense<0.000000e+00> : vector<8x128xf32>
    %252 = tpu.matmul %250, %251, %cst_161 {dimension_numbers = #tpu.dot_dimension_numbers<[1], [0], [0], [1], [0, 0, 1, 1], [], []>} : vector<8x8xf32>, vector<8x128xf32>, vector<8x128xf32> -> vector<8x128xf32>
    %253 = arith.addf %248, %252 : vector<8x128xf32>
    %c14_162 = arith.constant 14 : index
    %c0_163 = arith.constant 0 : index
    %c0_164 = arith.constant 0 : index
    %254 = vector.load %arg2[%c14_162, %c0_163, %c0_164] : memref<15x8x8xf32, #tpu.memory_space<vmem>>, vector<1x8x8xf32>
    %255 = vector.shape_cast %254 : vector<1x8x8xf32> to vector<8x8xf32>
    %256 = vector.extract_strided_slice %156 {offsets = [0, 12], sizes = [8, 128], strides = [1, 1]} : vector<8x140xf32> to vector<8x128xf32>
    %cst_165 = arith.constant dense<0.000000e+00> : vector<8x128xf32>
    %257 = tpu.matmul %255, %256, %cst_165 {dimension_numbers = #tpu.dot_dimension_numbers<[1], [0], [0], [1], [0, 0, 1, 1], [], []>} : vector<8x8xf32>, vector<8x128xf32>, vector<8x128xf32> -> vector<8x128xf32>
    %258 = arith.addf %253, %257 : vector<8x128xf32>
    %259 = vector.extract_strided_slice %0 {offsets = [16, 0], sizes = [8, 1], strides = [1, 1]} : vector<24x1xf32> to vector<8x1xf32>
    %260 = vector.broadcast %259 : vector<8x1xf32> to vector<8x128xf32>
    %261 = arith.addf %258, %260 : vector<8x128xf32>
    %cst_166 = arith.constant 0.000000e+00 : f32
    %262 = vector.broadcast %cst_166 : f32 to vector<8x128xf32>
    %263 = arith.subf %262, %261 : vector<8x128xf32>
    %264 = math.exp %263 : vector<8x128xf32>
    %cst_167 = arith.constant 1.000000e+00 : f32
    %265 = vector.broadcast %cst_167 : f32 to vector<8x128xf32>
    %266 = arith.addf %265, %264 : vector<8x128xf32>
    %cst_168 = arith.constant 1.000000e+00 : f32
    %267 = vector.broadcast %cst_168 : f32 to vector<8x128xf32>
    %268 = arith.divf %267, %266 : vector<8x128xf32>
    %269 = arith.mulf %261, %268 : vector<8x128xf32>
    %c16_169 = arith.constant 16 : index
    %c0_170 = arith.constant 0 : index
    %270 = vector.load %arg8[%c16_169, %c0_170] : memref<24x128xf32, #tpu.memory_space<vmem>>, vector<8x128xf32>
    tpu.vector_store %arg8[%c16_169, %c0_170], %269 {strides = array<i32>} : memref<24x128xf32, #tpu.memory_space<vmem>>, vector<8x128xf32>,
    %c0_171 = arith.constant 0 : index
    %c0_172 = arith.constant 0 : index
    %271 = vector.load %arg8[%c0_171, %c0_172] : memref<24x128xf32, #tpu.memory_space<vmem>>, vector<24x128xf32>
    %cst_173 = arith.constant dense<0.000000e+00> : vector<24xf32>
    %272 = vector.multi_reduction <add>, %271, %cst_173 [1] : vector<24x128xf32> to vector<24xf32>
    %273 = vector.shape_cast %272 : vector<24xf32> to vector<24x1xf32>
    %cst_174 = arith.constant 7.812500e-03 : f32
    %274 = vector.broadcast %cst_174 : f32 to vector<24x1xf32>
    %275 = arith.mulf %273, %274 : vector<24x1xf32>
    %cst_175 = arith.constant dense<0.000000e+00> : vector<12x1xf32>
    %276 = tpu.matmul %1, %275, %cst_175 {dimension_numbers = #tpu.dot_dimension_numbers<[1], [0], [0], [1], [0, 0, 1, 1], [], []>} : vector<12x24xf32>, vector<24x1xf32>, vector<12x1xf32> -> vector<12x1xf32>
    %cst_176 = arith.constant 0.000000e+00 : f32
    %277 = vector.broadcast %cst_176 : f32 to vector<12x1xf32>
    %278 = arith.cmpf ogt, %276, %277 : vector<12x1xf32>
    %cst_177 = arith.constant 0.00999999977 : f32
    %279 = vector.broadcast %cst_177 : f32 to vector<12x1xf32>
    %280 = arith.mulf %279, %276 : vector<12x1xf32>
    %281 = arith.select %278, %276, %280 : vector<12x1xi1>, vector<12x1xf32>
    %cst_178 = arith.constant dense<0.000000e+00> : vector<24x1xf32>
    %282 = tpu.matmul %2, %281, %cst_178 {dimension_numbers = #tpu.dot_dimension_numbers<[1], [0], [0], [1], [0, 0, 1, 1], [], []>} : vector<24x12xf32>, vector<12x1xf32>, vector<24x1xf32> -> vector<24x1xf32>
    %cst_179 = arith.constant 0.000000e+00 : f32
    %283 = vector.broadcast %cst_179 : f32 to vector<24x1xf32>
    %284 = arith.subf %283, %282 : vector<24x1xf32>
    %285 = math.exp %284 : vector<24x1xf32>
    %cst_180 = arith.constant 1.000000e+00 : f32
    %286 = vector.broadcast %cst_180 : f32 to vector<24x1xf32>
    %287 = arith.addf %286, %285 : vector<24x1xf32>
    %cst_181 = arith.constant 1.000000e+00 : f32
    %288 = vector.broadcast %cst_181 : f32 to vector<24x1xf32>
    %289 = arith.divf %288, %287 : vector<24x1xf32>
    %290 = vector.broadcast %289 : vector<24x1xf32> to vector<24x128xf32>
    %291 = arith.mulf %271, %290 : vector<24x128xf32>
    %cst_182 = arith.constant dense<0.000000e+00> : vector<8x128xf32>
    %292 = tpu.matmul %3, %291, %cst_182 {dimension_numbers = #tpu.dot_dimension_numbers<[1], [0], [0], [1], [0, 0, 1, 1], [], []>} : vector<8x24xf32>, vector<24x128xf32>, vector<8x128xf32> -> vector<8x128xf32>
    %293 = vector.extract_strided_slice %156 {offsets = [0, 6], sizes = [8, 128], strides = [1, 1]} : vector<8x140xf32> to vector<8x128xf32>
    %294 = arith.addf %293, %292 : vector<8x128xf32>
    %cst_183 = arith.constant 0.000000e+00 : f32
    %295 = vector.broadcast %cst_183 : f32 to vector<8x128xf32>
    %296 = arith.subf %295, %294 : vector<8x128xf32>
    %297 = math.exp %296 : vector<8x128xf32>
    %cst_184 = arith.constant 1.000000e+00 : f32
    %298 = vector.broadcast %cst_184 : f32 to vector<8x128xf32>
    %299 = arith.addf %298, %297 : vector<8x128xf32>
    %cst_185 = arith.constant 1.000000e+00 : f32
    %300 = vector.broadcast %cst_185 : f32 to vector<8x128xf32>
    %301 = arith.divf %300, %299 : vector<8x128xf32>
    %302 = arith.mulf %294, %301 : vector<8x128xf32>
    %c1_186 = arith.constant 1 : index
    %c0_187 = arith.constant 0 : index
    %c0_188 = arith.constant 0 : index
    %303 = vector.load %arg7[%c1_186, %c0_187, %c0_188] : memref<2x8x128xf32, #tpu.memory_space<vmem>>, vector<1x8x128xf32>
    %304 = vector.shape_cast %303 : vector<1x8x128xf32> to vector<8x128xf32>
    %305 = vector.shape_cast %302 : vector<8x128xf32> to vector<1x8x128xf32>
    tpu.vector_store %arg7[%c1_186, %c0_187, %c0_188], %305 {strides = array<i32>} : memref<2x8x128xf32, #tpu.memory_space<vmem>>, vector<1x8x128xf32>,
    return
  }
  func.func @transform_0(%arg0: i32) -> (i32, i32, i32) {
    %c0_i32 = arith.constant 0 : i32
    %c0_i32_0 = arith.constant 0 : i32
    %c0_i32_1 = arith.constant 0 : i32
    return %arg0, %c0_i32, %c0_i32_0 : i32, i32, i32
  }
  func.func @transform_1(%arg0: i32) -> (i32, i32, i32) {
    %c0_i32 = arith.constant 0 : i32
    %c0_i32_0 = arith.constant 0 : i32
    %c0_i32_1 = arith.constant 0 : i32
    %c0_i32_2 = arith.constant 0 : i32
    return %c0_i32, %c0_i32_0, %c0_i32_1 : i32, i32, i32
  }
  func.func @transform_2(%arg0: i32) -> (i32, i32) {
    %c0_i32 = arith.constant 0 : i32
    %c0_i32_0 = arith.constant 0 : i32
    %c0_i32_1 = arith.constant 0 : i32
    return %c0_i32, %c0_i32_0 : i32, i32
  }
  func.func @transform_3(%arg0: i32) -> (i32, i32) {
    %c0_i32 = arith.constant 0 : i32
    %c0_i32_0 = arith.constant 0 : i32
    %c0_i32_1 = arith.constant 0 : i32
    return %c0_i32, %c0_i32_0 : i32, i32
  }
  func.func @transform_4(%arg0: i32) -> (i32, i32) {
    %c0_i32 = arith.constant 0 : i32
    %c0_i32_0 = arith.constant 0 : i32
    %c0_i32_1 = arith.constant 0 : i32
    return %c0_i32, %c0_i32_0 : i32, i32
  }
  func.func @transform_5(%arg0: i32) -> (i32, i32) {
    %c0_i32 = arith.constant 0 : i32
    %c0_i32_0 = arith.constant 0 : i32
    %c0_i32_1 = arith.constant 0 : i32
    return %c0_i32, %c0_i32_0 : i32, i32
  }
  func.func @transform_6(%arg0: i32) -> (i32, i32, i32) {
    %c0_i32 = arith.constant 0 : i32
    %c0_i32_0 = arith.constant 0 : i32
    %c0_i32_1 = arith.constant 0 : i32
    return %arg0, %c0_i32, %c0_i32_0 : i32, i32, i32
  }
}

</mosaic_0001>

<bundles_post_ra>
// kernel: tpu_custom_call.1
= control target key start
LH: loop header
LB: loop body
LE: loop exit
PB: predicated region body
PF: predicated region fallthrough
CT: control target
= control target key end

     0   :  { %s3661_s23 = smov 124   ;;  %s3662_s24 = smov 123   ;;  %v3663_v2 = vmov 0.0   ;;  %vm3664_vm0 = vmmov 0   ;;  %s4215_s0 = inlined_call_operand.vmem [shape: f32[2,8,140], index: 0, kind: input, shape index: {}]   ;;  %s4216_s1 = inlined_call_operand.vmem [shape: f32[15,8,8], index: 1, kind: input, shape index: {}]   ;;  %s4217_s2 = inlined_call_operand.vmem [shape: f32[24,1], index: 2, kind: input, shape index: {}]   ;;  %s4218_s3 = inlined_call_operand.vmem [shape: f32[12,24], index: 3, kind: input, shape index: {}]   ;;  %s4219_s4 = inlined_call_operand.vmem [shape: f32[24,12], index: 4, kind: input, shape index: {}]   ;;  %s4220_s5 = inlined_call_operand.vmem [shape: f32[8,24], index: 5, kind: input, shape index: {}]   ;;  %s4221_s6 = inlined_call_operand.hbm [shape: f32[2,8,128], index: 6, kind: output, shape index: {}]  }
   0x1   :  { %v3718_v0 = vld [vmem:[%s4215_s0] sm:$0xff]  ;;  %v34_v1 = vld [vmem:[%s4215_s0 + $0x8] sm:$0xff]  ;;  %3316 = vmatprep.subr.mxu0 %v3663_v2  ;;  %3321 = vmatprep.subr.mxu1 %v3663_v2 }
   0x2   :  { %121 = vrot.lane.b32.xlu1 %v3718_v0, %s3661_s23  ;;  %40 = vrot.lane.b32.xlu0 %v3718_v0, %s3662_s24 }
   0x3   :  { %3318 = vmatprep.mubr.msk.f32.mxu0 %vm3664_vm0, %v3663_v2  ;;  %3323 = vmatprep.mubr.msk.f32.mxu1 %vm3664_vm0, %v3663_v2 }
   0x4   :  { %11 = vsyncpa [#allocation4], 0  ;;  %s3665_s27 = smov 122   ;;  %s3666_s28 = smov 121   ;;  %v3670_v3 = vmov 0   ;;  %v24_v4 = vld [vmem:[%s4217_s2] sm:$0xff] }
   0x5   :  { %s3667_s29 = smov 120   ;;  %s3668_s30 = smov 126   ;;  %3569 = vset.pattern.permute.xlu0 %v3670_v3  ;;  %3570 = vset.pattern.permute.xlu1 %v3670_v3  ;;  %v25_v5 = vld [vmem:[%s4217_s2 + $0x8] sm:$0xff]  ;;  %v26_v6 = vld [vmem:[%s4217_s2 + $0x10] sm:$0xff]  ;;  %vm44_vm1 = vcmask 1006592   ;;  %vm125_vm2 = vcmask 1014784  }
   0x6   :  { %123 = vrot.lane.b32.xlu1 %v34_v1, %s3661_s23  ;;  %42 = vrot.lane.b32.xlu0 %v34_v1, %s3662_s24  ;;  %s3669_s7 = smov 118   ;;  %s3671_s8 = smov 125   ;;  %v3771_v11 = vld [vmem:[%s4216_s1 + $0x8] sm:$0xff]  ;;  %vm47_vm3 = vcmask 64512   ;;  %v3778_v14 = vld [vmem:[%s4216_s1] sm:$0xff]  ;;  %vm207_vm4 = vcmask 998400  }
   0x7   :  { %s3672_s9 = smov 119   ;;  %s3673_s10 = smov 116   ;;  %v3790_v17 = vld [vmem:[%s4216_s1 + $0x10] sm:$0xff]  ;;  %vm290_vm5 = vcmask 990208   ;;  %v3805_v21 = vld [vmem:[%s4216_s1 + $0x18] sm:$0xff]  ;;  %vm373_vm6 = vcmask 982016  }
   0x8   :  { %v3818_v25 = vld [vmem:[%s4216_s1 + $0x20] sm:$0xff]  ;;  %v3823_v26 = vld [vmem:[%s4216_s1 + $0x30] sm:$0xff]  ;;  %vm545_vm7 = vcmask 1031168   ;;  %v3836_v30 = vld [vmem:[%s4216_s1 + $0x28] sm:$0xff]  ;;  %vm779_vm8 = vcmask 965632   ;;  %vm4224_vm9 = vcmask 1022976  }
   0x9   :  { %v3841_v31 = vld [vmem:[%s4216_s1 + $0x38] sm:$0xff]  ;;  %v3859_v35 = vld [vmem:[%s4216_s1 + $0x40] sm:$0xff]  ;;  %v3864_v36 = vld [vmem:[%s4216_s1 + $0x48] sm:$0xff]  ;;  %vm4223_vm10 = vcmask 973824   ;;  %vm4222_vm11 = vcmask 949248   ;;  %vm1295_vm12 = vcmask 195584  }
   0xa   :  { %205 = vrot.lane.b32.xlu1 %v34_v1, %s3665_s27  ;;  %203 = vrot.lane.b32.xlu0 %v3718_v0, %s3665_s27  ;;  %v3880_v40 = vld [vmem:[%s4216_s1 + $0x58] sm:$0xff]  ;;  %v3885_v41 = vld [vmem:[%s4216_s1 + $0x50] sm:$0xff]  ;;  %vm1393_vm14 = vcmask 1043456  }
   0xb   :  { %v3902_v45 = vld [vmem:[%s4216_s1 + $0x60] sm:$0xff]  ;;  %v3907_v46 = vld [vmem:[%s4216_s1 + $0x68] sm:$0xff]  ;;  %v3923_v50 = vld [vmem:[%s4216_s1 + $0x70] sm:$0xff] }
   0xe   :  { %288 = vrot.lane.b32.xlu1 %v34_v1, %s3666_s28  ;;  %286 = vrot.lane.b32.xlu0 %v3718_v0, %s3666_s28 }
  0x12   :  { %371 = vrot.lane.b32.xlu1 %v34_v1, %s3667_s29  ;;  %369 = vrot.lane.b32.xlu0 %v3718_v0, %s3667_s29 }
  0x16   :  { %543 = vrot.lane.b32.xlu1 %v34_v1, %s3668_s30  ;;  %541 = vrot.lane.b32.xlu0 %v3718_v0, %s3668_s30 }
  0x1a   :  { %777 = vrot.lane.b32.xlu1 %v34_v1, %s3669_s7  ;;  %775 = vrot.lane.b32.xlu0 %v3718_v0, %s3669_s7 }
  0x1e   :  { %876 = vrot.lane.b32.xlu1 %v34_v1, %s3671_s8  ;;  %874 = vrot.lane.b32.xlu0 %v3718_v0, %s3671_s8 }
  0x22   :  { %1107 = vrot.lane.b32.xlu1 %v34_v1, %s3672_s9  ;;  %1105 = vrot.lane.b32.xlu0 %v3718_v0, %s3672_s9 }
  0x26   :  { %1190 = vrot.lane.b32.xlu1 %v34_v1, %s3673_s10  ;;  %1188 = vrot.lane.b32.xlu0 %v3718_v0, %s3673_s10 }
  0x2a   :  { %452 = vperm.xlu0 %3569, %v24_v4   ;;  %858 = vperm.xlu1 %3570, %v25_v5  }
  0x2e   :  { %1271 = vperm.xlu1 %3570, %v26_v6  }
  0x74   :  { %v122_v7 = vpop.permute.xlu1 %121  ;;  %v41_v8 = vpop.permute.xlu0 %40 }
  0x78   :  { %v124_v9 = vpop.permute.xlu1 %123  ;;  %v43_v10 = vpop.permute.xlu0 %42 }
  0x79   :  { %v45_v12 = vsel %vm44_vm1, %v41_v8, %v43_v10  ;;  %v126_v13 = vsel %vm125_vm2, %v122_v7, %v124_v9 }
  0x7a   :  { %3317 = vmatpush3.msra.mxu0 %v45_v12  ;;  %3322 = vmatpush3.msra.mxu1 %v126_v13 }
  0x7b   :  { %3319 = vmatmul.mubr.msk.f32.vlgmr.msra.gmra.mrb[0].mxu0 %vm47_vm3, %v3771_v11  ;;  %3326 = vmatprep.subr.mxu0 %v3663_v2 }
  0x7c   :  { %v206_v15 = vpop.permute.xlu1 %205  ;;  %v204_v16 = vpop.permute.xlu0 %203  ;;  %3324 = vmatmul.mubr.msk.f32.vlgmr.msra.gmra.mrb[0].mxu1 %vm47_vm3, %v3778_v14  ;;  %3328 = vmatprep.mubr.msk.f32.mxu0 %vm3664_vm0, %v3663_v2 }
  0x7d   :  { %v3793_v18 = vsel %vm207_vm4, %v204_v16, %v206_v15  ;;  %3331 = vmatprep.subr.mxu1 %v3663_v2  ;;  %3333 = vmatprep.mubr.msk.f32.mxu1 %vm3664_vm0, %v3663_v2 }
  0x7e   :  { %3327 = vmatpush3.msra.mxu0 %v3793_v18 }
  0x7f   :  { %3329 = vmatmul.mubr.msk.f32.vlgmr.msra.gmra.mrb[2].mxu0 %vm47_vm3, %v3790_v17  ;;  %3336 = vmatprep.subr.mxu0 %v3663_v2 }
  0x80   :  { %v289_v19 = vpop.permute.xlu1 %288  ;;  %v287_v20 = vpop.permute.xlu0 %286  ;;  %3338 = vmatprep.mubr.msk.f32.mxu0 %vm3664_vm0, %v3663_v2 }
  0x81   :  { %v291_v22 = vsel %vm290_vm5, %v287_v20, %v289_v19 }
  0x82   :  { %3332 = vmatpush3.msra.mxu1 %v291_v22 }
  0x83   :  { %3334 = vmatmul.mubr.msk.f32.vlgmr.msra.gmra.mrb[2].mxu1 %vm47_vm3, %v3805_v21  ;;  %3341 = vmatprep.subr.mxu1 %v3663_v2 }
  0x84   :  { %v372_v23 = vpop.permute.xlu1 %371  ;;  %3342 = vmatpush3.msra.mxu1 %v126_v13  ;;  %v370_v24 = vpop.permute.xlu0 %369  ;;  %3343 = vmatprep.mubr.msk.f32.mxu1 %vm3664_vm0, %v3663_v2 }
  0x85   :  { %v374_v27 = vsel %vm373_vm6, %v370_v24, %v372_v23  ;;  %3351 = vmatprep.subr.mxu1 %v3663_v2 }
  0x86   :  { %3337 = vmatpush3.msra.mxu0 %v374_v27 }
  0x87   :  { %3339 = vmatmul.mubr.msk.f32.vlgmr.msra.gmra.mrb[4].mxu0 %vm47_vm3, %v3818_v25  ;;  %3344 = vmatmul.mubr.msk.f32.vlgmr.msra.gmra.mrb[4].mxu1 %vm47_vm3, %v3823_v26 }
  0x88   :  { %3352 = vmatpush3.msra.mxu1 %v3793_v18  ;;  %v544_v28 = vpop.permute.xlu1 %543  ;;  %v542_v29 = vpop.permute.xlu0 %541  ;;  %3346 = vmatprep.subr.mxu0 %v3663_v2 }
  0x89   :  { %v546_v32 = vsel %vm545_vm7, %v542_v29, %v544_v28  ;;  %3348 = vmatprep.mubr.msk.f32.mxu0 %vm3664_vm0, %v3663_v2  ;;  %3353 = vmatprep.mubr.msk.f32.mxu1 %vm3664_vm0, %v3663_v2 }
  0x8a   :  { %3347 = vmatpush3.msra.mxu0 %v546_v32  ;;  %3361 = vmatprep.subr.mxu1 %v3663_v2 }
  0x8b   :  { %3349 = vmatmul.mubr.msk.f32.vlgmr.msra.gmra.mrb[6].mxu0 %vm47_vm3, %v3836_v30  ;;  %3354 = vmatmul.mubr.msk.f32.vlgmr.msra.gmra.mrb[6].mxu1 %vm47_vm3, %v3841_v31 }
  0x8c   :  { %3356 = vmatprep.subr.mxu0 %v3663_v2  ;;  %v778_v33 = vpop.permute.xlu1 %777  ;;  %v776_v34 = vpop.permute.xlu0 %775  ;;  %3358 = vmatprep.mubr.msk.f32.mxu0 %vm3664_vm0, %v3663_v2 }
  0x8d   :  { %3357 = vmatpush3.msra.mxu0 %v374_v27  ;;  %v780_v37 = vsel %vm779_vm8, %v776_v34, %v778_v33  ;;  %3363 = vmatprep.mubr.msk.f32.mxu1 %vm3664_vm0, %v3663_v2 }
  0x8e   :  { %3362 = vmatpush3.msra.mxu1 %v780_v37  ;;  %3366 = vmatprep.subr.mxu0 %v3663_v2 }
  0x8f   :  { %3359 = vmatmul.mubr.msk.f32.vlgmr.msra.gmra.mrb[8].mxu0 %vm47_vm3, %v3859_v35  ;;  %3364 = vmatmul.mubr.msk.f32.vlgmr.msra.gmra.mrb[8].mxu1 %vm47_vm3, %v3864_v36 }
  0x90   :  { %v877_v38 = vpop.permute.xlu1 %876  ;;  %v875_v39 = vpop.permute.xlu0 %874  ;;  %3371 = vmatprep.subr.mxu1 %v3663_v2  ;;  %3368 = vmatprep.mubr.msk.f32.mxu0 %vm3664_vm0, %v3663_v2 }
  0x91   :  { %v879_v42 = vsel %vm4224_vm9, %v875_v39, %v877_v38  ;;  %3372 = vmatpush3.msra.mxu1 %v3718_v0  ;;  %3373 = vmatprep.mubr.msk.f32.mxu1 %vm3664_vm0, %v3663_v2  ;;  %vm1383_vm9 = vcmask 97280  }
  0x92   :  { %3367 = vmatpush3.msra.mxu0 %v879_v42  ;;  %3381 = vmatprep.subr.mxu1 %v3663_v2 }
  0x93   :  { %3369 = vmatmul.mubr.msk.f32.vlgmr.msra.gmra.mrb[10].mxu0 %vm47_vm3, %v3880_v40  ;;  %3374 = vmatmul.mubr.msk.f32.vlgmr.msra.gmra.mrb[10].mxu1 %vm47_vm3, %v3885_v41 }
  0x94   :  { %3376 = vmatprep.subr.mxu0 %v3663_v2  ;;  %v1108_v43 = vpop.permute.xlu1 %1107  ;;  %v1106_v44 = vpop.permute.xlu0 %1105  ;;  %3378 = vmatprep.mubr.msk.f32.mxu0 %vm3664_vm0, %v3663_v2 }
  0x95   :  { %3377 = vmatpush3.msra.mxu0 %v3793_v18  ;;  %v1110_v47 = vsel %vm4223_vm10, %v1106_v44, %v1108_v43  ;;  %3383 = vmatprep.mubr.msk.f32.mxu1 %vm3664_vm0, %v3663_v2 }
  0x96   :  { %3382 = vmatpush3.msra.mxu1 %v1110_v47  ;;  %3386 = vmatprep.subr.mxu0 %v3663_v2 }
  0x97   :  { %3379 = vmatmul.mubr.msk.f32.vlgmr.msra.gmra.mrb[12].mxu0 %vm47_vm3, %v3902_v45  ;;  %3384 = vmatmul.mubr.msk.f32.vlgmr.msra.gmra.mrb[12].mxu1 %vm47_vm3, %v3907_v46 }
  0x98   :  { %v1191_v48 = vpop.permute.xlu1 %1190  ;;  %v1189_v49 = vpop.permute.xlu0 %1188  ;;  %3388 = vmatprep.mubr.msk.f32.mxu0 %vm3664_vm0, %v3663_v2 }
  0x99   :  { %v1193_v51 = vsel %vm4222_vm11, %v1189_v49, %v1191_v48  ;;  %vm3675_vm11 = vmmov 1  }
  0x9a   :  { %3387 = vmatpush3.msra.mxu0 %v1193_v51  ;;  %vm3966_vm10 = vmpackc.low %vm1393_vm14, %vm3675_vm11 }
  0x9b   :  { %3389 = vmatmul.mubr.msk.f32.vlgmr.msra.gmra.mrb[14].mxu0 %vm47_vm3, %v3923_v50 }
  0x9c   :  { %3404 = vmatprep.mubr.msk.f32.mxu0 %vm3664_vm0, %v3663_v2 }
  0xa9   :  { %v3930_v63 = vpop.permute.xlu0 %452  ;;  %v3933_v24 = vpop.permute.xlu1 %858 }
 0x14e   :  { %v117_v52 = vpop.f32.mrb[0].mxu0 }
 0x14f   :  { %v3320_v53 = vpop.f32.mrb[1].mxu0  ;;  %v197_v54 = vpop.f32.mrb[0].mxu1 }
 0x150   :  { %v198_v55 = vadd.f32 %v197_v54, %v117_v52  ;;  %v3325_v56 = vpop.f32.mrb[1].mxu1 }
 0x151   :  { %v3936_v56 = vpop.permute.xlu1 %1271 }
 0x152   :  { %v279_v57 = vpop.f32.mrb[2].mxu0 }
 0x153   :  { %v283_v58 = vadd.f32 %v279_v57, %v198_v55  ;;  %v3330_v59 = vpop.f32.mrb[3].mxu0 }
 0x156   :  { %v362_v60 = vpop.f32.mrb[2].mxu1 }
 0x157   :  { %v366_v61 = vadd.f32 %v362_v60, %v283_v58  ;;  %v3335_v62 = vpop.f32.mrb[3].mxu1 }
 0x15a   :  { %v445_v0 = vpop.f32.mrb[4].mxu0  ;;  %v537_v1 = vpop.f32.mrb[4].mxu1 }
 0x15b   :  { %v449_v3 = vadd.f32 %v445_v0, %v366_v61  ;;  %v3340_v4 = vpop.f32.mrb[5].mxu0  ;;  %v3345_v5 = vpop.f32.mrb[5].mxu1 }
 0x15d   :  { %v455_v6 = vadd.f32 %v3930_v63, %v449_v3 }
 0x15e   :  { %v617_v7 = vpop.f32.mrb[6].mxu0  ;;  %v692_v8 = vpop.f32.mrb[6].mxu1 }
 0x15f   :  { %v456_v9 = vsub.f32 0.0, %v455_v6  ;;  %v618_v10 = vadd.f32 %v617_v7, %v537_v1  ;;  %v3350_v12 = vpop.f32.mrb[7].mxu0  ;;  %v3355_v13 = vpop.f32.mrb[7].mxu1 }
 0x161   :  { %v457_v15 = vmul.f32 1.442695, %v456_v9  ;;  %v696_v16 = vadd.f32 %v692_v8, %v618_v10 }
 0x162   :  { %v768_v18 = vpop.f32.mrb[8].mxu0  ;;  %v851_v19 = vpop.f32.mrb[8].mxu1 }
 0x163   :  { %3571 = vpow2.f32 %v457_v15  ;;  %v772_v20 = vadd.f32 %v768_v18, %v696_v16  ;;  %v3360_v22 = vpop.f32.mrb[9].mxu0  ;;  %v3365_v23 = vpop.f32.mrb[9].mxu1 }
 0x165   :  { %v855_v27 = vadd.f32 %v851_v19, %v772_v20  ;;  %v3958_v19 = vld [vmem:[%s4218_s3 + $0x8] sm:$0xf]  ;;  %v3674_v20 = vmov 0.0|0.0  }
 0x166   :  { %v950_v28 = vpop.f32.mrb[10].mxu0  ;;  %v1023_v29 = vpop.f32.mrb[10].mxu1  ;;  %3532 = vmatprep.subr.bf16.mxu0 %v3674_v20 }
 0x167   :  { %v1024_v32 = vadd.f32 %v1023_v29, %v950_v28  ;;  %v861_v33 = vadd.f32 %v3933_v24, %v855_v27  ;;  %v3370_v34 = vpop.f32.mrb[11].mxu0  ;;  %v3375_v37 = vpop.f32.mrb[11].mxu1 }
 0x168   :  { %v3975_v37 = vld [vmem:[%s4219_s4] sm:$0xff] }
 0x169   :  { %v862_v38 = vsub.f32 0.0, %v861_v33 }
 0x16a   :  { %v1098_v39 = vpop.f32.mrb[12].mxu0  ;;  %v1181_v42 = vpop.f32.mrb[12].mxu1 }
 0x16b   :  { %v863_v43 = vmul.f32 1.442695, %v862_v38  ;;  %v1102_v44 = vadd.f32 %v1098_v39, %v1024_v32  ;;  %v3380_v47 = vpop.f32.mrb[13].mxu0  ;;  %v3385_v48 = vpop.f32.mrb[13].mxu1  ;;  %v3985_v38 = vld [vmem:[%s4219_s4 + $0x8] sm:$0xff]  ;;  %v3994_v39 = vld [vmem:[%s4219_s4 + $0x10] sm:$0xff] }
 0x16d   :  { %v3572_v49 = vpop.eup %3571  ;;  %3573 = vpow2.f32 %v863_v43  ;;  %v1185_v51 = vadd.f32 %v1181_v42, %v1102_v44 }
 0x16e   :  { %v459_v52 = vadd.f32 1.0, %v3572_v49  ;;  %v1264_v53 = vpop.f32.mrb[14].mxu0 }
 0x16f   :  { %v1268_v54 = vadd.f32 %v1264_v53, %v1185_v51  ;;  %v3390_v55 = vpop.f32.mrb[15].mxu0 }
 0x170   :  { %3575 = vrcp.f32 %v459_v52 }
 0x171   :  { %v1274_v57 = vadd.f32 %v3936_v56, %v1268_v54 }
 0x173   :  { %v1275_v58 = vsub.f32 0.0, %v1274_v57 }
 0x175   :  { %v1276_v59 = vmul.f32 1.442695, %v1275_v58 }
 0x177   :  { %v3574_v60 = vpop.eup %3573  ;;  %3577 = vpow2.f32 %v1276_v59 }
 0x178   :  { %v865_v61 = vadd.f32 1.0, %v3574_v60 }
 0x17a   :  { %v3576_v62 = vpop.eup %3575  ;;  %3579 = vrcp.f32 %v865_v61 }
 0x17b   :  { %v3939_v0 = vmul.f32 %v3576_v62, %v455_v6  ;;  %v3951_v6 = vld [vmem:[%s4218_s3] sm:$0xff] }
 0x17c   :  { %3397 = vmatprep.mubr.msk.f32.mxu1 %vm1295_vm12, %v3951_v6 }
 0x17d   :  { %1286 = vadd.xlane.f32.xlu0 %v3939_v0 }
 0x181   :  { %v3578_v1 = vpop.eup %3577 }
 0x182   :  { %v1278_v3 = vadd.f32 1.0, %v3578_v1 }
 0x184   :  { %v3580_v4 = vpop.eup %3579  ;;  %3581 = vrcp.f32 %v1278_v3 }
 0x185   :  { %v3942_v5 = vmul.f32 %v3580_v4, %v861_v33  ;;  %v4003_v4 = vld [vmem:[%s4215_s0 + $0x10] sm:$0xff] }
 0x187   :  { %1288 = vadd.xlane.f32.xlu1 %v3942_v5 }
 0x18e   :  { %v3582_v7 = vpop.eup %3581 }
 0x18f   :  { %v3945_v8 = vmul.f32 %v3582_v7, %v1274_v57 }
 0x191   :  { %1290 = vadd.xlane.f32.xlu0 %v3945_v8 }
 0x20a   :  { %v1287_v9 = vpop.xlane.xlu0 %1286 }
 0x20b   :  { %v1292_v12 = vmul.f32 0.0078125, %v1287_v9 }
 0x214   :  { %v1289_v10 = vpop.xlane.xlu1 %1288 }
 0x215   :  { %v1293_v13 = vmul.f32 0.0078125, %v1289_v10  ;;  %v4012_v10 = vld [vmem:[%s4215_s0 + $0x18] sm:$0xff] }
 0x217   :  { %v3528_v15 = vpack.c.bf16 %v1293_v13, %v1292_v12 }
 0x219   :  { %3529 = vmatprep.subr.bf16.mxu1 %v3528_v15 }
 0x21a   :  { %3531 = vmatpush3.bf16.msra.mxu1 %v3528_v15 }
 0x21e   :  { %v1291_v16 = vpop.xlane.xlu0 %1290 }
 0x21f   :  { %v1294_v18 = vmul.f32 0.0078125, %v1291_v16 }
 0x221   :  { %3395 = vmatprep.subr.mxu1 %v1294_v18 }
 0x222   :  { %3396 = vmatpush3.msra.mxu1 %v1294_v18 }
 0x223   :  { %3398 = vmatmul.mubr.msk.f32.vlgmr.msra.gmra.mrb[14].mxu1 %vm1295_vm12, %v3958_v19  ;;  %3536 = vmatprep.subr.bf16.mxu1 %v3674_v20 }
 0x224   :  { %3419 = vmatprep.mubr.msk.f32.mxu1 %vm3664_vm0, %v3663_v2 }
 0x2f6   :  { %v3399_v22 = vpop.f32.mrb[14].mxu1 }
 0x2f7   :  { %vm1378_vm13 = vcmp.gt.f32.partialorder %v3399_v22, 0.0  ;;  %v1380_v23 = vmul.f32 0.01, %v3399_v22  ;;  %v1368_v27 = vpop.f32.mrb[15].mxu1 }
 0x2f8   :  { %vm1377_vm15 = vcmp.gt.f32.partialorder %v1368_v27, 0.0  ;;  %v1379_v28 = vmul.f32 0.01, %v1368_v27 }
 0x2f9   :  { %v1382_v29 = vsel %vm1378_vm13, %v3399_v22, %v1380_v23 }
 0x2fa   :  { %v1381_v32 = vsel %vm1377_vm15, %v1368_v27, %v1379_v28 }
 0x2fb   :  { %v3533_v34 = vpack.c.bf16 %v1382_v29, %v1381_v32  ;;  %v4057_v29 = vld [vmem:[%s4220_s5] sm:$0xff]  ;;  %s3676_s5 = smov 6  }
 0x2fd   :  { %3535 = vmatpush3.bf16.msk.msra.mxu0 %vm3966_vm10, %v3533_v34 }
 0x2fe   :  { %3427 = vmatprep.subr.mxu0 %v3663_v2 }
 0x300   :  { %3405 = vmatmul.mubr.msk.f32.vlgmr.msra.gmra.mrb[16].mxu0 %vm1383_vm9, %v3975_v37 }
 0x301   :  { %3407 = vmatprep.mubr.msk.f32.mxu0 %vm3664_vm0, %v3663_v2 }
 0x304   :  { %3408 = vmatmul.mubr.msk.f32.gmra.mrb[18].mxu0 %vm1383_vm9, %v3985_v38 }
 0x305   :  { %3410 = vmatprep.mubr.msk.f32.mxu0 %vm3664_vm0, %v3663_v2 }
 0x308   :  { %3411 = vmatmul.mubr.msk.f32.gmra.mrb[20].mxu0 %vm1383_vm9, %v3994_v39 }
 0x309   :  { %3429 = vmatprep.mubr.msk.f32.mxu0 %vm3664_vm0, %v3663_v2 }
 0x3d3   :  { %v1463_v42 = vpop.f32.mrb[16].mxu0 }
 0x3d4   :  { %v1477_v43 = vsub.f32 0.0, %v1463_v42  ;;  %v3406_v44 = vpop.f32.mrb[17].mxu0 }
 0x3d6   :  { %v1480_v47 = vmul.f32 1.442695, %v1477_v43 }
 0x3d7   :  { %v1468_v48 = vpop.f32.mrb[18].mxu0 }
 0x3d8   :  { %3583 = vpow2.f32 %v1480_v47  ;;  %v1478_v49 = vsub.f32 0.0, %v1468_v48  ;;  %v3409_v51 = vpop.f32.mrb[19].mxu0 }
 0x3da   :  { %v1482_v52 = vmul.f32 1.442695, %v1478_v49 }
 0x3db   :  { %v1473_v53 = vpop.f32.mrb[20].mxu0 }
 0x3dc   :  { %3585 = vpow2.f32 %v1482_v52  ;;  %v1479_v54 = vsub.f32 0.0, %v1473_v53  ;;  %v3412_v55 = vpop.f32.mrb[21].mxu0 }
 0x3de   :  { %v1484_v57 = vmul.f32 1.442695, %v1479_v54 }
 0x3e0   :  { %3587 = vpow2.f32 %v1484_v57 }
 0x3e2   :  { %v3584_v58 = vpop.eup %3583 }
 0x3e3   :  { %v1486_v59 = vadd.f32 1.0, %v3584_v58 }
 0x3e5   :  { %3589 = vrcp.f32 %v1486_v59 }
 0x3e6   :  { %v3586_v60 = vpop.eup %3585 }
 0x3e7   :  { %v1487_v61 = vadd.f32 1.0, %v3586_v60 }
 0x3e9   :  { %3591 = vrcp.f32 %v1487_v61 }
 0x3ea   :  { %v3588_v62 = vpop.eup %3587 }
 0x3eb   :  { %v1488_v1 = vadd.f32 1.0, %v3588_v62 }
 0x3ed   :  { %3593 = vrcp.f32 %v1488_v1 }
 0x3ef   :  { %v3590_v3 = vpop.eup %3589 }
 0x3f0   :  { %1497 = vperm.xlu0 %3569, %v3590_v3  }
 0x3f3   :  { %v3592_v7 = vpop.eup %3591 }
 0x3f4   :  { %1502 = vperm.xlu1 %3570, %v3592_v7   ;;  %1622 = vrot.lane.b32.xlu0 %v4003_v4, %s3662_s24 }
 0x3f7   :  { %v3594_v9 = vpop.eup %3593 }
 0x3f8   :  { %1507 = vperm.xlu1 %3570, %v3594_v9   ;;  %1701 = vrot.lane.b32.xlu0 %v4003_v4, %s3661_s23 }
 0x3fc   :  { %1624 = vrot.lane.b32.xlu1 %v4012_v10, %s3662_s24  ;;  %1781 = vrot.lane.b32.xlu0 %v4003_v4, %s3665_s27 }
 0x400   :  { %1703 = vrot.lane.b32.xlu1 %v4012_v10, %s3661_s23  ;;  %1862 = vrot.lane.b32.xlu0 %v4003_v4, %s3666_s28 }
 0x404   :  { %1783 = vrot.lane.b32.xlu1 %v4012_v10, %s3665_s27  ;;  %1943 = vrot.lane.b32.xlu0 %v4003_v4, %s3667_s29 }
 0x408   :  { %1864 = vrot.lane.b32.xlu1 %v4012_v10, %s3666_s28  ;;  %2107 = vrot.lane.b32.xlu0 %v4003_v4, %s3668_s30 }
 0x40c   :  { %1945 = vrot.lane.b32.xlu1 %v4012_v10, %s3667_s29  ;;  %2337 = vrot.lane.b32.xlu0 %v4003_v4, %s3669_s7 }
 0x410   :  { %2109 = vrot.lane.b32.xlu1 %v4012_v10, %s3668_s30  ;;  %2428 = vrot.lane.b32.xlu0 %v4003_v4, %s3671_s8 }
 0x414   :  { %2339 = vrot.lane.b32.xlu1 %v4012_v10, %s3669_s7  ;;  %2656 = vrot.lane.b32.xlu0 %v4003_v4, %s3672_s9 }
 0x418   :  { %2430 = vrot.lane.b32.xlu1 %v4012_v10, %s3671_s8  ;;  %2737 = vrot.lane.b32.xlu0 %v4003_v4, %s3673_s10 }
 0x41c   :  { %2658 = vrot.lane.b32.xlu1 %v4012_v10, %s3672_s9 }
 0x420   :  { %2739 = vrot.lane.b32.xlu1 %v4012_v10, %s3673_s10 }
 0x46f   :  { %v1498_v12 = vpop.permute.xlu0 %1497 }
 0x470   :  { %v1510_v16 = vmul.f32 %v1498_v12, %v3939_v0 }
 0x473   :  { %v1503_v13 = vpop.permute.xlu1 %1502  ;;  %v1623_v15 = vpop.permute.xlu0 %1622 }
 0x474   :  { %v1511_v18 = vmul.f32 %v1503_v13, %v3942_v5 }
 0x476   :  { %v3537_v22 = vpack.c.bf16 %v1511_v18, %v1510_v16 }
 0x477   :  { %v1508_v23 = vpop.permute.xlu1 %1507  ;;  %v1702_v27 = vpop.permute.xlu0 %1701 }
 0x478   :  { %3538 = vmatpush3.bf16.msra.mxu1 %v3537_v22  ;;  %v1512_v28 = vmul.f32 %v1508_v23, %v3945_v8 }
 0x479   :  { %3417 = vmatprep.subr.mxu1 %v3663_v2 }
 0x47b   :  { %v1625_v32 = vpop.permute.xlu1 %1624  ;;  %v1782_v34 = vpop.permute.xlu0 %1781 }
 0x47c   :  { %v1626_v42 = vsel %vm44_vm1, %v1623_v15, %v1625_v32  ;;  %3418 = vmatpush3.msra.mxu1 %v1512_v28  ;;  %vm4227_vm1 = vcmask 1022976  }
 0x47d   :  { %3422 = vmatprep.subr.mxu1 %v3663_v2  ;;  %3420 = vmatmul.mubr.msk.f32.vlgmr.msra.gmra.mrb[16].mxu1 %vm1295_vm12, %v4057_v29 }
 0x47e   :  { %3423 = vmatpush3.msra.mxu1 %v1626_v42  ;;  %3424 = vmatprep.mubr.msk.f32.mxu1 %vm3664_vm0, %v3663_v2 }
 0x47f   :  { %v1704_v0 = vpop.permute.xlu1 %1703  ;;  %3432 = vmatprep.subr.mxu1 %v3663_v2  ;;  %v1863_v5 = vpop.permute.xlu0 %1862 }
 0x480   :  { %v1705_v8 = vsel %vm125_vm2, %v1702_v27, %v1704_v0  ;;  %vm4228_vm2 = vcmask 973824  }
 0x481   :  { %3428 = vmatpush3.msra.mxu0 %v1705_v8  ;;  %3425 = vmatmul.mubr.msk.f32.vlgmr.msra.gmra.mrb[18].mxu1 %vm47_vm3, %v3771_v11 }
 0x482   :  { %3430 = vmatmul.mubr.msk.f32.vlgmr.msra.gmra.mrb[22].mxu0 %vm47_vm3, %v3778_v14  ;;  %3437 = vmatprep.subr.mxu0 %v3663_v2 }
 0x483   :  { %v1784_v43 = vpop.permute.xlu1 %1783  ;;  %3434 = vmatprep.mubr.msk.f32.mxu1 %vm3664_vm0, %v3663_v2  ;;  %3439 = vmatprep.mubr.msk.f32.mxu0 %vm3664_vm0, %v3663_v2  ;;  %v1944_v44 = vpop.permute.xlu0 %1943 }
 0x484   :  { %v1785_v47 = vsel %vm207_vm4, %v1782_v34, %v1784_v43 }
 0x485   :  { %3433 = vmatpush3.msra.mxu1 %v1785_v47 }
 0x486   :  { %3435 = vmatmul.mubr.msk.f32.vlgmr.msra.gmra.mrb[20].mxu1 %vm47_vm3, %v3790_v17  ;;  %3442 = vmatprep.subr.mxu1 %v3663_v2 }
 0x487   :  { %v1865_v11 = vpop.permute.xlu1 %1864  ;;  %3444 = vmatprep.mubr.msk.f32.mxu1 %vm3664_vm0, %v3663_v2  ;;  %v2108_v14 = vpop.permute.xlu0 %2107 }
 0x488   :  { %v1866_v48 = vsel %vm290_vm5, %v1863_v5, %v1865_v11  ;;  %vm4229_vm5 = vcmask 949248  }
 0x489   :  { %3438 = vmatpush3.msra.mxu0 %v1866_v48 }
 0x48a   :  { %3440 = vmatmul.mubr.msk.f32.vlgmr.msra.gmra.mrb[24].mxu0 %vm47_vm3, %v3805_v21  ;;  %3447 = vmatprep.subr.mxu0 %v3663_v2 }
 0x48b   :  { %3448 = vmatpush3.msra.mxu0 %v1705_v8  ;;  %v1946_v49 = vpop.permute.xlu1 %1945  ;;  %3449 = vmatprep.mubr.msk.f32.mxu0 %vm3664_vm0, %v3663_v2  ;;  %v2338_v17 = vpop.permute.xlu0 %2337 }
 0x48c   :  { %v1947_v51 = vsel %vm373_vm6, %v1944_v44, %v1946_v49  ;;  %3457 = vmatprep.subr.mxu0 %v3663_v2 }
 0x48d   :  { %3443 = vmatpush3.msra.mxu1 %v1947_v51 }
 0x48e   :  { %3445 = vmatmul.mubr.msk.f32.vlgmr.msra.gmra.mrb[22].mxu1 %vm47_vm3, %v3818_v25  ;;  %3450 = vmatmul.mubr.msk.f32.vlgmr.msra.gmra.mrb[26].mxu0 %vm47_vm3, %v3823_v26 }
 0x48f   :  { %3458 = vmatpush3.msra.mxu0 %v1785_v47  ;;  %v2110_v21 = vpop.permute.xlu1 %2109  ;;  %3452 = vmatprep.subr.mxu1 %v3663_v2  ;;  %v2429_v53 = vpop.permute.xlu0 %2428 }
 0x490   :  { %v2111_v52 = vsel %vm545_vm7, %v2108_v14, %v2110_v21  ;;  %3454 = vmatprep.mubr.msk.f32.mxu1 %vm3664_vm0, %v3663_v2  ;;  %3459 = vmatprep.mubr.msk.f32.mxu0 %vm3664_vm0, %v3663_v2 }
 0x491   :  { %3453 = vmatpush3.msra.mxu1 %v2111_v52  ;;  %3467 = vmatprep.subr.mxu0 %v3663_v2 }
 0x492   :  { %3455 = vmatmul.mubr.msk.f32.vlgmr.msra.gmra.mrb[24].mxu1 %vm47_vm3, %v3836_v30  ;;  %3462 = vmatprep.subr.mxu1 %v3663_v2 }
 0x493   :  { %3463 = vmatpush3.msra.mxu1 %v1947_v51  ;;  %v2340_v25 = vpop.permute.xlu1 %2339  ;;  %3460 = vmatmul.mubr.msk.f32.vlgmr.msra.gmra.mrb[28].mxu0 %vm47_vm3, %v3841_v31  ;;  %v2657_v31 = vpop.permute.xlu0 %2656 }
 0x494   :  { %v2341_v26 = vsel %vm779_vm8, %v2338_v17, %v2340_v25  ;;  %3464 = vmatprep.mubr.msk.f32.mxu1 %vm3664_vm0, %v3663_v2  ;;  %3469 = vmatprep.mubr.msk.f32.mxu0 %vm3664_vm0, %v3663_v2 }
 0x495   :  { %3468 = vmatpush3.msra.mxu0 %v2341_v26  ;;  %3472 = vmatprep.subr.mxu1 %v3663_v2 }
 0x496   :  { %3465 = vmatmul.mubr.msk.f32.vlgmr.msra.gmra.mrb[26].mxu1 %vm47_vm3, %v3859_v35  ;;  %3477 = vmatprep.subr.mxu0 %v3663_v2 }
 0x497   :  { %v2431_v30 = vpop.permute.xlu1 %2430  ;;  %3470 = vmatmul.mubr.msk.f32.vlgmr.msra.gmra.mrb[30].mxu0 %vm47_vm3, %v3864_v36  ;;  %3474 = vmatprep.mubr.msk.f32.mxu1 %vm3664_vm0, %v3663_v2  ;;  %v2738_v55 = vpop.permute.xlu0 %2737 }
 0x498   :  { %v2432_v54 = vsel %vm4227_vm1, %v2429_v53, %v2431_v30  ;;  %3478 = vmatpush3.msra.mxu0 %v4003_v4  ;;  %3479 = vmatprep.mubr.msk.f32.mxu0 %vm3664_vm0, %v3663_v2 }
 0x499   :  { %3473 = vmatpush3.msra.mxu1 %v2432_v54  ;;  %3487 = vmatprep.subr.mxu0 %v3663_v2 }
 0x49a   :  { %3475 = vmatmul.mubr.msk.f32.vlgmr.msra.gmra.mrb[28].mxu1 %vm47_vm3, %v3880_v40  ;;  %3482 = vmatprep.subr.mxu1 %v3663_v2 }
 0x49b   :  { %3483 = vmatpush3.msra.mxu1 %v1785_v47  ;;  %v2659_v35 = vpop.permute.xlu1 %2658  ;;  %3480 = vmatmul.mubr.msk.f32.vlgmr.msra.gmra.mrb[32].mxu0 %vm47_vm3, %v3885_v41 }
 0x49c   :  { %v2660_v36 = vsel %vm4228_vm2, %v2657_v31, %v2659_v35  ;;  %3484 = vmatprep.mubr.msk.f32.mxu1 %vm3664_vm0, %v3663_v2  ;;  %3489 = vmatprep.mubr.msk.f32.mxu0 %vm3664_vm0, %v3663_v2 }
 0x49d   :  { %3488 = vmatpush3.msra.mxu0 %v2660_v36  ;;  %3492 = vmatprep.subr.mxu1 %v3663_v2 }
 0x49e   :  { %3485 = vmatmul.mubr.msk.f32.vlgmr.msra.gmra.mrb[30].mxu1 %vm47_vm3, %v3902_v45 }
 0x49f   :  { %v2740_v40 = vpop.permute.xlu1 %2739  ;;  %3490 = vmatmul.mubr.msk.f32.vlgmr.msra.gmra.mrb[34].mxu0 %vm47_vm3, %v3907_v46  ;;  %3494 = vmatprep.mubr.msk.f32.mxu1 %vm3664_vm0, %v3663_v2 }
 0x4a0   :  { %v2741_v41 = vsel %vm4229_vm5, %v2738_v55, %v2740_v40  ;;  %3503 = vmatprep.mubr.msk.f32.mxu0 %vm1295_vm12, %v3951_v6 }
 0x4a1   :  { %3493 = vmatpush3.msra.mxu1 %v2741_v41 }
 0x4a2   :  { %3495 = vmatmul.mubr.msk.f32.vlgmr.msra.gmra.mrb[32].mxu1 %vm47_vm3, %v3923_v50  ;;  %3543 = vmatprep.subr.bf16.mxu1 %v3674_v20 }
 0x4a3   :  { %3510 = vmatprep.mubr.msk.f32.mxu1 %vm3664_vm0, %v3663_v2 }
 0x550   :  { %v4149_v45 = vpop.f32.mrb[16].mxu1 }
 0x551   :  { %v3421_v46 = vpop.f32.mrb[17].mxu1 }
 0x554   :  { %v1697_v57 = vpop.f32.mrb[18].mxu1 }
 0x555   :  { %v1776_v58 = vpop.f32.mrb[22].mxu0  ;;  %v3426_v59 = vpop.f32.mrb[19].mxu1 }
 0x556   :  { %v1777_v60 = vadd.f32 %v1776_v58, %v1697_v57  ;;  %v3431_v61 = vpop.f32.mrb[23].mxu0 }
 0x559   :  { %v1856_v62 = vpop.f32.mrb[20].mxu1 }
 0x55a   :  { %v1860_v1 = vadd.f32 %v1856_v62, %v1777_v60  ;;  %v3436_v6 = vpop.f32.mrb[21].mxu1 }
 0x55d   :  { %v1937_v3 = vpop.f32.mrb[24].mxu0 }
 0x55e   :  { %v1941_v7 = vadd.f32 %v1937_v3, %v1860_v1  ;;  %v3441_v9 = vpop.f32.mrb[25].mxu0 }
 0x561   :  { %v2018_v50 = vpop.f32.mrb[22].mxu1  ;;  %v2103_v12 = vpop.f32.mrb[26].mxu0 }
 0x562   :  { %v2022_v13 = vadd.f32 %v2018_v50, %v1941_v7  ;;  %v3446_v15 = vpop.f32.mrb[23].mxu1  ;;  %v3451_v16 = vpop.f32.mrb[27].mxu0 }
 0x564   :  { %v2023_v18 = vadd.f32 %v2022_v13, %v3930_v63 }
 0x565   :  { %v2182_v22 = vpop.f32.mrb[24].mxu1 }
 0x566   :  { %v2024_v23 = vsub.f32 0.0, %v2023_v18  ;;  %v2183_v27 = vadd.f32 %v2182_v22, %v2103_v12  ;;  %v2256_v28 = vpop.f32.mrb[28].mxu0  ;;  %v3456_v32 = vpop.f32.mrb[25].mxu1 }
 0x567   :  { %v3461_v34 = vpop.f32.mrb[29].mxu0 }
 0x568   :  { %v2025_v42 = vmul.f32 1.442695, %v2024_v23  ;;  %v2260_v0 = vadd.f32 %v2256_v28, %v2183_v27 }
 0x569   :  { %v2331_v5 = vpop.f32.mrb[26].mxu1 }
 0x56a   :  { %3595 = vpow2.f32 %v2025_v42  ;;  %v2335_v8 = vadd.f32 %v2331_v5, %v2260_v0  ;;  %v2412_v43 = vpop.f32.mrb[30].mxu0  ;;  %v3466_v44 = vpop.f32.mrb[27].mxu1 }
 0x56b   :  { %v3471_v47 = vpop.f32.mrb[31].mxu0 }
 0x56c   :  { %v2416_v11 = vadd.f32 %v2412_v43, %v2335_v8 }
 0x56d   :  { %v2503_v14 = vpop.f32.mrb[28].mxu1 }
 0x56e   :  { %v2417_v48 = vadd.f32 %v2416_v11, %v3933_v24  ;;  %v2576_v49 = vpop.f32.mrb[32].mxu0  ;;  %v3476_v63 = vpop.f32.mrb[29].mxu1 }
 0x56f   :  { %v2577_v17 = vadd.f32 %v2576_v49, %v2503_v14  ;;  %v3481_v51 = vpop.f32.mrb[33].mxu0 }
 0x570   :  { %v2418_v21 = vsub.f32 0.0, %v2417_v48 }
 0x571   :  { %v2650_v52 = vpop.f32.mrb[30].mxu1 }
 0x572   :  { %v2419_v53 = vmul.f32 1.442695, %v2418_v21  ;;  %v2654_v25 = vadd.f32 %v2650_v52, %v2577_v17  ;;  %v2731_v26 = vpop.f32.mrb[34].mxu0  ;;  %v3486_v30 = vpop.f32.mrb[31].mxu1 }
 0x573   :  { %v3491_v31 = vpop.f32.mrb[35].mxu0 }
 0x574   :  { %v3596_v54 = vpop.eup %3595  ;;  %3597 = vpow2.f32 %v2419_v53  ;;  %v2735_v35 = vadd.f32 %v2731_v26, %v2654_v25  ;;  %v3635_v31 = vld [vmem:[%s4215_s0] sm:$0xff] }
 0x575   :  { %v2027_v36 = vadd.f32 1.0, %v3596_v54  ;;  %v2812_v55 = vpop.f32.mrb[32].mxu1 }
 0x576   :  { %v2816_v40 = vadd.f32 %v2812_v55, %v2735_v35  ;;  %v3496_v41 = vpop.f32.mrb[33].mxu1 }
 0x577   :  { %3599 = vrcp.f32 %v2027_v36 }
 0x578   :  { %v2817_v24 = vadd.f32 %v2816_v40, %v3936_v56 }
 0x57a   :  { %v2818_v46 = vsub.f32 0.0, %v2817_v24 }
 0x57c   :  { %v2819_v57 = vmul.f32 1.442695, %v2818_v46 }
 0x57e   :  { %v3598_v58 = vpop.eup %3597  ;;  %3601 = vpow2.f32 %v2819_v57 }
 0x57f   :  { %v2421_v59 = vadd.f32 1.0, %v3598_v58 }
 0x581   :  { %v3600_v60 = vpop.eup %3599  ;;  %3603 = vrcp.f32 %v2421_v59  ;;  %v3636_v59 = vld [vmem:[%s4215_s0 + $0x8] sm:$0xff]  ;;  %s3677_s0 = smov [#allocation3]  }
 0x582   :  { %v4154_v61 = vmul.f32 %v3600_v60, %v2023_v18  ;;  %s3143_s8 = sshll.u32 %s3677_s0, 4  ;;  %s3144_s8 = int_to_ptr.vmem [resolvable:$true] %s3143_s8 }
 0x583   :  { %s3637_s9 = scalar_lea.vmem %s3144_s8, 256  ;;  %p3642_p1 = scmp.lt.s32.totalorder %s3144_s8, %s3144_s8 }
 0x584   :  { %2829 = vadd.xlane.f32.xlu0 %v4154_v61  ;;  %p3638_p0 = scmp.ne.s32.totalorder %s3144_s8, %s3637_s9  ;;  %p3643_p2 = scmp.lt.s32.totalorder %s3637_s9, %s3637_s9 }
 0x586   :  { %p3644_p3 = por %p3643_p2, %p3642_p1 }
 0x588   :  { %v3602_v62 = vpop.eup %3601  ;;  %p3645_p4 = pnand %p3644_p3, %p3638_p0 }
 0x589   :  { %v2821_v1 = vadd.f32 1.0, %v3602_v62 }
 0x58b   :  { %v3604_v6 = vpop.eup %3603  ;;  %3605 = vrcp.f32 %v2821_v1 }
 0x58c   :  { %v4157_v3 = vmul.f32 %v3604_v6, %v2417_v48 }
 0x58e   :  { %2831 = vadd.xlane.f32.xlu1 %v4157_v3 }
 0x595   :  { %v3606_v56 = vpop.eup %3605 }
 0x596   :  { %v4160_v7 = vmul.f32 %v3606_v56, %v2817_v24 }
 0x598   :  { %2833 = vadd.xlane.f32.xlu0 %v4160_v7 }
 0x611   :  { %v2830_v9 = vpop.xlane.xlu0 %2829 }
 0x612   :  { %v2835_v12 = vmul.f32 0.0078125, %v2830_v9 }
 0x61b   :  { %v2832_v50 = vpop.xlane.xlu1 %2831 }
 0x61c   :  { %v2836_v13 = vmul.f32 0.0078125, %v2832_v50 }
 0x61e   :  { %v3539_v15 = vpack.c.bf16 %v2836_v13, %v2835_v12 }
 0x620   :  { %3540 = vmatprep.subr.bf16.mxu0 %v3539_v15 }
 0x621   :  { %3542 = vmatpush3.bf16.msra.mxu0 %v3539_v15 }
 0x625   :  { %v2834_v16 = vpop.xlane.xlu0 %2833 }
 0x626   :  { %v2837_v18 = vmul.f32 0.0078125, %v2834_v16 }
 0x628   :  { %3501 = vmatprep.subr.mxu0 %v2837_v18 }
 0x629   :  { %3502 = vmatpush3.msra.mxu0 %v2837_v18 }
 0x62a   :  { %3504 = vmatmul.mubr.msk.f32.vlgmr.msra.gmra.mrb[36].mxu0 %vm1295_vm12, %v3958_v19  ;;  %3547 = vmatprep.subr.bf16.mxu0 %v3674_v20 }
 0x62b   :  { %3525 = vmatprep.mubr.msk.f32.mxu0 %vm3664_vm0, %v3663_v2 }
 0x6fd   :  { %v3505_v22 = vpop.f32.mrb[36].mxu0 }
 0x6fe   :  { %vm2914_vm3 = vcmp.gt.f32.partialorder %v3505_v22, 0.0  ;;  %v2916_v23 = vmul.f32 0.01, %v3505_v22  ;;  %v2904_v27 = vpop.f32.mrb[37].mxu0 }
 0x6ff   :  { %vm2913_vm6 = vcmp.gt.f32.partialorder %v2904_v27, 0.0  ;;  %v2915_v28 = vmul.f32 0.01, %v2904_v27 }
 0x700   :  { %v2918_v32 = vsel %vm2914_vm3, %v3505_v22, %v2916_v23 }
 0x701   :  { %v2917_v34 = vsel %vm2913_vm6, %v2904_v27, %v2915_v28 }
 0x702   :  { %v3544_v42 = vpack.c.bf16 %v2918_v32, %v2917_v34 }
 0x704   :  { %3546 = vmatpush3.bf16.msk.msra.mxu1 %vm3966_vm10, %v3544_v42 }
 0x707   :  { %3511 = vmatmul.mubr.msk.f32.vlgmr.msra.gmra.mrb[34].mxu1 %vm1383_vm9, %v3975_v37 }
 0x708   :  { %3513 = vmatprep.mubr.msk.f32.mxu1 %vm3664_vm0, %v3663_v2 }
 0x70b   :  { %3514 = vmatmul.mubr.msk.f32.gmra.mrb[36].mxu1 %vm1383_vm9, %v3985_v38 }
 0x70c   :  { %3516 = vmatprep.mubr.msk.f32.mxu1 %vm3664_vm0, %v3663_v2 }
 0x70f   :  { %3517 = vmatmul.mubr.msk.f32.gmra.mrb[38].mxu1 %vm1383_vm9, %v3994_v39 }
 0x7da   :  { %v2988_v19 = vpop.f32.mrb[34].mxu1 }
 0x7db   :  { %v3002_v20 = vsub.f32 0.0, %v2988_v19  ;;  %v3512_v0 = vpop.f32.mrb[35].mxu1 }
 0x7dd   :  { %v3005_v33 = vmul.f32 1.442695, %v3002_v20 }
 0x7de   :  { %v2993_v5 = vpop.f32.mrb[36].mxu1 }
 0x7df   :  { %3607 = vpow2.f32 %v3005_v33  ;;  %v3003_v8 = vsub.f32 0.0, %v2993_v5  ;;  %v3515_v37 = vpop.f32.mrb[37].mxu1 }
 0x7e1   :  { %v3007_v43 = vmul.f32 1.442695, %v3003_v8 }
 0x7e2   :  { %v2998_v44 = vpop.f32.mrb[38].mxu1 }
 0x7e3   :  { %3609 = vpow2.f32 %v3007_v43  ;;  %v3004_v47 = vsub.f32 0.0, %v2998_v44  ;;  %v3518_v11 = vpop.f32.mrb[39].mxu1 }
 0x7e5   :  { %v3009_v38 = vmul.f32 1.442695, %v3004_v47 }
 0x7e7   :  { %3611 = vpow2.f32 %v3009_v38 }
 0x7e9   :  { %v3608_v14 = vpop.eup %3607 }
 0x7ea   :  { %v3011_v48 = vadd.f32 1.0, %v3608_v14 }
 0x7ec   :  { %3613 = vrcp.f32 %v3011_v48 }
 0x7ed   :  { %v3610_v49 = vpop.eup %3609 }
 0x7ee   :  { %v3012_v39 = vadd.f32 1.0, %v3610_v49 }
 0x7f0   :  { %3615 = vrcp.f32 %v3012_v39 }
 0x7f1   :  { %v3612_v63 = vpop.eup %3611 }
 0x7f2   :  { %v3013_v17 = vadd.f32 1.0, %v3612_v63 }
 0x7f4   :  { %3617 = vrcp.f32 %v3013_v17 }
 0x7f6   :  { %v3614_v51 = vpop.eup %3613 }
 0x7f7   :  { %3022 = vperm.xlu0 %3569, %v3614_v51  }
 0x7fa   :  { %v3616_v21 = vpop.eup %3615 }
 0x7fb   :  { %1587 = vrot.lane.b32.xlu0 %v4149_v45, %s3676_s5  ;;  %3027 = vperm.xlu1 %3570, %v3616_v21  }
 0x7fe   :  { %v3618_v52 = vpop.eup %3617 }
 0x7ff   :  { %3032 = vperm.xlu1 %3570, %v3618_v52  }
 0x876   :  { %v3023_v53 = vpop.permute.xlu0 %3022 }
 0x877   :  { %v3035_v30 = vmul.f32 %v3023_v53, %v4154_v61 }
 0x87a   :  { %v1588_v25 = vpop.permute.xlu0 %1587  ;;  %v3028_v26 = vpop.permute.xlu1 %3027 }
 0x87b   :  { %v1590_v54 = vadd.f32 %v3635_v31, %v1588_v25  ;;  %v3036_v35 = vmul.f32 %v3028_v26, %v4157_v3  ;;  %v1591_v60 = vadd.f32 %v3636_v59, %v1588_v25 }
 0x87d   :  { %v1592_v36 = vsub.f32 0.0, %v1590_v54  ;;  %v3548_v55 = vpack.c.bf16 %v3036_v35, %v3035_v30 }
 0x87e   :  { %v3033_v40 = vpop.permute.xlu1 %3032 }
 0x87f   :  { %v1594_v41 = vmul.f32 1.442695, %v1592_v36  ;;  %3549 = vmatpush3.bf16.msra.mxu0 %v3548_v55  ;;  %v3037_v45 = vmul.f32 %v3033_v40, %v4160_v7 }
 0x880   :  { %3523 = vmatprep.subr.mxu0 %v3663_v2  ;;  %v1593_v2 = vsub.f32 0.0, %v1591_v60 }
 0x881   :  { %3619 = vpow2.f32 %v1594_v41 }
 0x882   :  { %v1596_v61 = vmul.f32 1.442695, %v1593_v2 }
 0x883   :  { %3524 = vmatpush3.msra.mxu0 %v3037_v45 }
 0x884   :  { %3526 = vmatmul.mubr.msk.f32.vlgmr.msra.gmra.mrb[38].mxu0 %vm1295_vm12, %v4057_v29 }
 0x88b   :  { %v3620_v24 = vpop.eup %3619 }
 0x88c   :  { %v1598_v46 = vadd.f32 1.0, %v3620_v24 }
 0x88e   :  { %3621 = vrcp.f32 %v1598_v46 }
 0x88f   :  { %3623 = vpow2.f32 %v1596_v61 }
 0x898   :  { %v3622_v57 = vpop.eup %3621 }
 0x899   :  { %v1604_v58 = vmul.f32 %v3622_v57, %v1590_v54  ;;  %v3624_v62 = vpop.eup %3623 }
 0x89a   :  { %v1599_v1 = vadd.f32 1.0, %v3624_v62 }
 0x89b   :  { %1608 = vrot.lane.b32.xlu0 %v1604_v58, %s3665_s27 }
 0x89c   :  { %3625 = vrcp.f32 %v1599_v1 }
 0x8a6   :  { %v3626_v6 = vpop.eup %3625 }
 0x8a7   :  { %v1605_v56 = vmul.f32 %v3626_v6, %v1591_v60 }
 0x90d   :  { %v1609_v15 = vpop.permute.xlu0 %1608 }
 0x957   :  { %v3104_v29 = vpop.f32.mrb[38].mxu0 }
 0x958   :  { %3109 = vrot.lane.b32.xlu1 %v3104_v29, %s3676_s5  ;;  %v3527_v3 = vpop.f32.mrb[39].mxu0 }
 0x95c   :  { %1610 = vrot.lane.b32.xlu1 %v1605_v56, %s3665_s27 }
 0x9ca   :  { %v3110_v7 = vpop.permute.xlu1 %3109 }
 0x9cb   :  { %v3112_v9 = vadd.f32 %v4003_v4, %v3110_v7  ;;  %v3113_v50 = vadd.f32 %v4012_v10, %v3110_v7 }
 0x9cd   :  { %v3114_v12 = vsub.f32 0.0, %v3112_v9  ;;  %v3115_v13 = vsub.f32 0.0, %v3113_v50 }
 0x9ce   :  { %v1611_v16 = vpop.permute.xlu1 %1610 }
 0x9cf   :  { %v3116_v18 = vmul.f32 1.442695, %v3114_v12  ;;  %v3118_v22 = vmul.f32 1.442695, %v3115_v13  ;;  %v1612_v23 = vsel %vm207_vm4, %v1609_v15, %v1611_v16 }
 0x9d0   :  { %1614 = vst [vmem:[#allocation3] sm:$0xff] %v1612_v23 }
 0x9d1   :  { %3627 = vpow2.f32 %v3116_v18 }
 0x9d2   :  { %3629 = vpow2.f32 %v3118_v22 }
 0x9db   :  { %v3628_v27 = vpop.eup %3627 }
 0x9dc   :  { %v3630_v28 = vpop.eup %3629  ;;  %v3120_v32 = vadd.f32 1.0, %v3628_v27 }
 0x9dd   :  { %v3121_v34 = vadd.f32 1.0, %v3630_v28 }
 0x9de   :  { %3631 = vrcp.f32 %v3120_v32 }
 0x9df   :  { %3633 = vrcp.f32 %v3121_v34 }
 0x9e8   :  { %v3632_v4 = vpop.eup %3631 }
 0x9e9   :  { %v3634_v42 = vpop.eup %3633  ;;  %v3126_v10 = vmul.f32 %v3632_v4, %v3112_v9 }
 0x9ea   :  { %v3127_v19 = vmul.f32 %v3634_v42, %v3113_v50 }
 0x9eb   :  { %3130 = vrot.lane.b32.xlu0 %v3126_v10, %s3665_s27 }
 0x9ec   :  { %3132 = vrot.lane.b32.xlu1 %v3127_v19, %s3665_s27 }
 0xa5d   :  { %v3131_v20 = vpop.permute.xlu0 %3130 }
 0xa5e   :  { %v3133_v0 = vpop.permute.xlu1 %3132 }
 0xa5f   :  { %v3134_v33 = vsel %vm207_vm4, %v3131_v20, %v3133_v0 }
 0xa60   :  { %3137 = vst [vmem:[#allocation3 + $0x8] sm:$0xff] %v3134_v33 }
 0xa61   :  { %3648 = shalt.err (!%p3645_p4)
}
 0xa62   :  { %s3649_s14 = scalar_lea.hbm %s4221_s6, 256 }
 0xa63   :  { %p3650_p5 = scmp.ne.s32.totalorder %s4221_s6, %s3649_s14  ;;  %p3653_p6 = scmp.lt.u32.totalorder %s3649_s14, %s4221_s6 }
 0xa65   :  { %p3655_p7 = pnand %p3653_p6, %p3650_p5 }
 0xa67   :  { %3658 = shalt.err (!%p3655_p7)
}
 0xa68   :  { %s3678_s17 = smov 128   ;;  %s3679_s18 = smov 8  }
 0xa69   :  { %3149 = dma.vmem_to_hbm [thread:$0]  %s3144_s8, 256, %s4221_s6, [#allocation4], %s3678_s17, %s3678_s17, %s3679_s18  }
 0xa6a   :  { %3659 = dma.done.wait [#allocation4], 256  }
 0xa6b   :  { %3660 = vsyncadd [#allocation4], 4294967040 }
 0xa6c   :  { %3153 = vsyncpa [#allocation4], 1 }

</bundles_post_ra>
